<compile_context>
chip_gen: v7x
topology: tpu7x:2x2x1
jax: 0.10.0
libtpu: 0.0.40
codegen_flags: <defaults>
</compile_context>

<pallas_src>
import jax
import jax.numpy as jnp
import numpy as np
from jax.experimental import pallas as pl
from jax.experimental.pallas import tpu as pltpu


# ------------------------------ fused kernel --------------------------------

def _make_kernel(l_out2, l_out3, l_out4, hidden, stride):
    """Static geometry captured by closure: l_out of layers 2-4, head width."""

    def kernel(x1_ref,
               w1_ref, b1_ref, sc1_ref, sh1_ref,
               w2_ref, b2_ref, sc2_ref, sh2_ref,
               w3_ref, b3_ref, sc3_ref, sh3_ref,
               w4_ref, b4_ref, sc4_ref, sh4_ref,
               wom_ref, uom_ref, owt_ref, ob_ref,
               out_ref,
               a1_ref, a2_ref, a3_ref):
        # ---- layer 1: ONE (L1, K*Cin) @ (K*Cin, 64) matmul on the MXU ------
        y1 = jnp.dot(x1_ref[...], w1_ref[...], preferred_element_type=jnp.float32)
        a1_ref[...] = (jnp.maximum(y1 + b1_ref[...], 0.0) * sc1_ref[...]
                       + sh1_ref[...])

        # ---- layers 2-4: K=3 taps as stride-2 sublane reads of VMEM scratch
        def conv_relu_bn(src_ref, w_ref, b_ref, sc_ref, sh_ref, l_out):
            c_out = w_ref.shape[2]
            acc = jnp.zeros((l_out, c_out), jnp.float32)
            for k in range(w_ref.shape[0]):                       # static taps
                xk = src_ref[pl.ds(k, l_out, stride=stride), :]
                acc = acc + jnp.dot(xk, w_ref[k],
                                    preferred_element_type=jnp.float32)
            # conv bias -> ReLU -> BN(scale, shift): scale applied after ReLU,
            # so the fold is exact for any sign of gamma.
            return jnp.maximum(acc + b_ref[...], 0.0) * sc_ref[...] + sh_ref[...]

        a2_ref[...] = conv_relu_bn(a1_ref, w2_ref, b2_ref, sc2_ref, sh2_ref, l_out2)
        a3_ref[...] = conv_relu_bn(a2_ref, w3_ref, b3_ref, sc3_ref, sh3_ref, l_out3)
        feats = conv_relu_bn(a3_ref, w4_ref, b4_ref, sc4_ref, sh4_ref, l_out4)

        # ---- attention + linear head: VPU/XLU/EUP only (no MXU pushes) -----
        # feats is (hidden, 64): channels on lanes -> the softmax over the 64
        # channels is a lane reduction.
        frows = [feats[h:h + 1, :] for h in range(hidden)]        # each (1, 64)
        att = None
        for i in range(hidden):                                   # u_omega term i
            acc = frows[0] * wom_ref[0, i]                        # scalar * vector
            for j in range(1, hidden):
                acc = acc + frows[j] * wom_ref[j, i]
            term = uom_ref[i, 0] * jnp.tanh(acc)
            att = term if att is None else att + term             # (1, 64)
        att = att - jnp.max(att, axis=-1, keepdims=True)
        e = jnp.exp(att)
        denom = jnp.sum(e, axis=-1, keepdims=True)                # (1, 1)
        score = e * pl.reciprocal(denom, approx=True)             # EUP reciprocal
        y = ob_ref[...]                                           # (1, out_dim)
        for h in range(hidden):
            pooled_h = jnp.sum(frows[h] * score, axis=-1, keepdims=True)  # (1, 1)
            y = y + owt_ref[h:h + 1, :] * pooled_h
        out_ref[...] = y                                          # one store/step

    return kernel


# ------------------------------ JAX wrapper ----------------------------------

def channel_filter_forward(p, x):
    """x: (B, input_dim, L) in PyTorch NCL convention -> (B, output_dim)."""
    B, c_in, L0 = x.shape
    layers = (
        (p["conv1_w"], p["conv1_b"], p["bn1_scale"], p["bn1_shift"]),
        (p["conv2_w"], p["conv2_b"], p["bn2_scale"], p["bn2_shift"]),
        (p["conv3_w"], p["conv3_b"], p["bn3_scale"], p["bn3_shift"]),
        (p["conv4_w"], p["conv4_b"], p["bn4_scale"], p["bn4_shift"]),
    )
    stride = 2

    # Static geometry: L0 -> L1 -> L2 -> L3 -> H (must equal hidden_dim).
    lens = [L0]
    for (W, *_rest) in layers:
        lens.append((lens[-1] - W.shape[2]) // stride + 1)
    L1, L2, L3, H = lens[1], lens[2], lens[3], lens[4]
    hidden = p["w_omega"].shape[0]
    assert H == hidden, "final conv length must equal the attention hidden dim"
    out_dim = p["out_w"].shape[0]
    c_outs = [W.shape[0] for (W, *_rest) in layers]

    # Layer-1 im2col slab built once on the XLA side: (B, L1, K1*c_in).
    K1 = layers[0][0].shape[2]
    tap_idx = jnp.arange(L1)[:, None] * stride + jnp.arange(K1)[None, :]
    slab = jnp.transpose(x[:, :, tap_idx], (0, 2, 1, 3)).reshape(B, L1, c_in * K1)
    w1f = layers[0][0].reshape(c_outs[0], c_in * K1).T             # (K1*c_in, 64)

    def row(v):                        # (C,) -> (1, C), channels on lanes
        return v.reshape(1, -1)

    def vmem_full(a):                  # whole-array VMEM block, constant index
        zeros = (0,) * a.ndim
        return pl.BlockSpec(a.shape, lambda b, _z=zeros: _z)

    smem = pl.BlockSpec(memory_space=pltpu.MemorySpace.SMEM)

    args = [slab]
    in_specs = [pl.BlockSpec((None, L1, c_in * K1), lambda b: (b, 0, 0))]

    def add(a, spec=None):
        args.append(a)
        in_specs.append(vmem_full(a) if spec is None else spec)

    add(w1f)
    add(row(layers[0][1])); add(row(layers[0][2])); add(row(layers[0][3]))
    for (W, bias, scale, shift) in layers[1:]:
        add(W.transpose(2, 1, 0))                                  # (K, C_in, C_out)
        add(row(bias)); add(row(scale)); add(row(shift))
    add(p["w_omega"], smem)            # (hidden, hidden) scalars in SMEM
    add(p["u_omega"], smem)            # (hidden, 1)      scalars in SMEM
    add(p["out_w"].T)                  # (hidden, out_dim)
    add(row(p["out_b"]))               # (1, out_dim)

    kernel = _make_kernel(L2, L3, H, hidden, stride)
    out = pl.pallas_call(
        kernel,
        grid=(B,),
        in_specs=in_specs,
        out_specs=pl.BlockSpec((None, 1, out_dim), lambda b: (b, 0, 0)),
        out_shape=jax.ShapeDtypeStruct((B, 1, out_dim), jnp.float32),
        scratch_shapes=[
            pltpu.VMEM((L1, c_outs[0]), jnp.float32),   # layer-1 activation
            pltpu.VMEM((L2, c_outs[1]), jnp.float32),   # layer-2 activation
            pltpu.VMEM((L3, c_outs[2]), jnp.float32),   # layer-3 activation
        ],
        compiler_params=pltpu.CompilerParams(
            dimension_semantics=("parallel",)),          # megacore batch split
    )(*args)
    return out.reshape(B, out_dim)


# --------------------------- Model parameters --------------------------------

def bn_fold(gamma, beta, mean, var, eps=1e-5):
    # Eval-mode BatchNorm folded to y = x * scale + shift (applied AFTER ReLU
    # in the forward pass, exactly like the PyTorch conv -> ReLU -> BN order).
    scale = gamma / jnp.sqrt(var + eps)
    shift = beta - mean * scale
    return scale, shift


def init_params(key, input_dim, output_dim, hidden_dim=2):
    ks = jax.random.split(key, 32)
    u = lambda k, shp, lo, hi: jax.random.uniform(k, shp, jnp.float32, lo, hi)

    def conv_p(k1, k2, c_out, c_in, ksz):
        bound = 1.0 / np.sqrt(c_in * ksz)
        return (u(k1, (c_out, c_in, ksz), -bound, bound),
                u(k2, (c_out,), -bound, bound))

    def bn_p(k1, k2, k3, k4, c):
        gamma = u(k1, (c,), 0.5, 1.5)
        beta = u(k2, (c,), -0.1, 0.1)
        mean = u(k3, (c,), -0.1, 0.1)
        var = u(k4, (c,), 0.5, 1.5)
        return bn_fold(gamma, beta, mean, var)

    p = {}
    p["conv1_w"], p["conv1_b"] = conv_p(ks[0], ks[1], 64, input_dim, 20)
    p["bn1_scale"], p["bn1_shift"] = bn_p(ks[2], ks[3], ks[4], ks[5], 64)
    p["conv2_w"], p["conv2_b"] = conv_p(ks[6], ks[7], 128, 64, 3)
    p["bn2_scale"], p["bn2_shift"] = bn_p(ks[8], ks[9], ks[10], ks[11], 128)
    p["conv3_w"], p["conv3_b"] = conv_p(ks[12], ks[13], 64, 128, 3)
    p["bn3_scale"], p["bn3_shift"] = bn_p(ks[14], ks[15], ks[16], ks[17], 64)
    p["conv4_w"], p["conv4_b"] = conv_p(ks[18], ks[19], 64, 64, 3)
    p["bn4_scale"], p["bn4_shift"] = bn_p(ks[20], ks[21], ks[22], ks[23], 64)
    bound = 1.0 / np.sqrt(hidden_dim)
    p["out_w"] = u(ks[24], (output_dim, hidden_dim), -bound, bound)
    p["out_b"] = u(ks[25], (output_dim,), -bound, bound)
    p["w_omega"] = u(ks[26], (hidden_dim, hidden_dim), -0.1, 0.1)
    p["u_omega"] = u(ks[27], (hidden_dim, 1), -0.1, 0.1)
    return p


# ---------------------------- Pure-JAX reference ----------------------------

def _im2col(x, K, stride):
    B, C, L = x.shape
    L_out = (L - K) // stride + 1
    idx = (jnp.arange(L_out) * stride)[None, :] + jnp.arange(K)[:, None]
    cols = x[:, :, idx]                                      # (B, C, K, L_out)
    return cols.reshape(B, C * K, L_out), L_out


def reference_forward(p, x):
    HI = jax.lax.Precision.HIGHEST   # f32-accurate reference matmuls

    def conv(x, W, b, scale, shift, s):
        B, C_in, _ = x.shape
        C_out, _, K = W.shape
        patches, _ = _im2col(x, K, s)
        y = jnp.einsum("of,bfl->bol", W.reshape(C_out, C_in * K), patches,
                       precision=HI)
        y = jnp.maximum(y + b[None, :, None], 0.0)
        return y * scale[None, :, None] + shift[None, :, None]

    y = conv(x, p["conv1_w"], p["conv1_b"], p["bn1_scale"], p["bn1_shift"], 2)
    y = conv(y, p["conv2_w"], p["conv2_b"], p["bn2_scale"], p["bn2_shift"], 2)
    y = conv(y, p["conv3_w"], p["conv3_b"], p["bn3_scale"], p["bn3_shift"], 2)
    y = conv(y, p["conv4_w"], p["conv4_b"], p["bn4_scale"], p["bn4_shift"], 2)
    u = jnp.tanh(jnp.matmul(y, p["w_omega"], precision=HI))
    att = jnp.matmul(u, p["u_omega"], precision=HI)
    score = jax.nn.softmax(att, axis=1)
    pooled = jnp.sum(y * score, axis=1)
    return jnp.matmul(pooled, p["out_w"].T, precision=HI) + p["out_b"]


# --------------------------------- Main --------------------------------------

if __name__ == "__main__":
    key = jax.random.PRNGKey(0)
    k_param, k_x = jax.random.split(key)

    # seq_len=64 -> conv lengths 23 -> 11 -> 5 -> 2 == hidden_dim, as required
    # by the module's Linear(2, output_dim) and w_omega shapes.
    batch, input_dim, output_dim, seq_len = 2, 4, 4, 64
    params = init_params(k_param, input_dim, output_dim)
    x = jax.random.normal(k_x, (batch, input_dim, seq_len), jnp.float32)

    fwd = jax.jit(channel_filter_forward)
    out = jax.block_until_ready(fwd(params, x))

    ref = jax.block_until_ready(reference_forward(params, x))
    assert out.shape == (batch, output_dim)
    # Tightened 10x from the previous 2e-2.  Expected agreement is ~1e-4; the
    # remaining headroom covers the EUP approximate reciprocal in the softmax
    # and MXU f32 pass-decomposition differences vs the HIGHEST-precision XLA
    # reference.  Layout / accumulation bugs would show up as O(1) errors.
    np.testing.assert_allclose(np.asarray(out), np.asarray(ref),
                               rtol=2e-3, atol=2e-3)

    print("KERNEL_OK")
</pallas_src>

<mosaic_0001>
module attributes {stable_mosaic.version = 11 : i64} {
  func.func @kernel(%arg0: i32, %arg1: memref<1x23x80xf32, #tpu.memory_space<vmem>>, %arg2: memref<80x64xf32, #tpu.memory_space<vmem>>, %arg3: memref<1x64xf32, #tpu.memory_space<vmem>>, %arg4: memref<1x64xf32, #tpu.memory_space<vmem>>, %arg5: memref<1x64xf32, #tpu.memory_space<vmem>>, %arg6: memref<3x64x128xf32, #tpu.memory_space<vmem>>, %arg7: memref<1x128xf32, #tpu.memory_space<vmem>>, %arg8: memref<1x128xf32, #tpu.memory_space<vmem>>, %arg9: memref<1x128xf32, #tpu.memory_space<vmem>>, %arg10: memref<3x128x64xf32, #tpu.memory_space<vmem>>, %arg11: memref<1x64xf32, #tpu.memory_space<vmem>>, %arg12: memref<1x64xf32, #tpu.memory_space<vmem>>, %arg13: memref<1x64xf32, #tpu.memory_space<vmem>>, %arg14: memref<3x64x64xf32, #tpu.memory_space<vmem>>, %arg15: memref<1x64xf32, #tpu.memory_space<vmem>>, %arg16: memref<1x64xf32, #tpu.memory_space<vmem>>, %arg17: memref<1x64xf32, #tpu.memory_space<vmem>>, %arg18: memref<2x2xf32, #tpu.memory_space<smem>>, %arg19: memref<2x1xf32, #tpu.memory_space<smem>>, %arg20: memref<2x4xf32, #tpu.memory_space<vmem>>, %arg21: memref<1x4xf32, #tpu.memory_space<vmem>>, %arg22: memref<1x1x4xf32, #tpu.memory_space<vmem>>, %arg23: memref<23x64xf32, #tpu.memory_space<vmem>>, %arg24: memref<11x128xf32, #tpu.memory_space<vmem>>, %arg25: memref<5x64xf32, #tpu.memory_space<vmem>>) attributes {dimension_semantics = [#tpu.dimension_semantics<parallel>], iteration_bounds = array<i64: 2>, scalar_prefetch = 0 : i64, scratch_operands = 3 : i64, tpu.core_type = #tpu.core_type<tc>, window_params = [{transform_indices = @transform_0, window_bounds = array<i64: 1, 23, 80>}, {pipeline_mode = #tpu.pipeline_mode<synchronous>, transform_indices = @transform_1, window_bounds = array<i64: 80, 64>}, {pipeline_mode = #tpu.pipeline_mode<synchronous>, transform_indices = @transform_2, window_bounds = array<i64: 1, 64>}, {pipeline_mode = #tpu.pipeline_mode<synchronous>, transform_indices = @transform_3, window_bounds = array<i64: 1, 64>}, {pipeline_mode = #tpu.pipeline_mode<synchronous>, transform_indices = @transform_4, window_bounds = array<i64: 1, 64>}, {pipeline_mode = #tpu.pipeline_mode<synchronous>, transform_indices = @transform_5, window_bounds = array<i64: 3, 64, 128>}, {pipeline_mode = #tpu.pipeline_mode<synchronous>, transform_indices = @transform_6, window_bounds = array<i64: 1, 128>}, {pipeline_mode = #tpu.pipeline_mode<synchronous>, transform_indices = @transform_7, window_bounds = array<i64: 1, 128>}, {pipeline_mode = #tpu.pipeline_mode<synchronous>, transform_indices = @transform_8, window_bounds = array<i64: 1, 128>}, {pipeline_mode = #tpu.pipeline_mode<synchronous>, transform_indices = @transform_9, window_bounds = array<i64: 3, 128, 64>}, {pipeline_mode = #tpu.pipeline_mode<synchronous>, transform_indices = @transform_10, window_bounds = array<i64: 1, 64>}, {pipeline_mode = #tpu.pipeline_mode<synchronous>, transform_indices = @transform_11, window_bounds = array<i64: 1, 64>}, {pipeline_mode = #tpu.pipeline_mode<synchronous>, transform_indices = @transform_12, window_bounds = array<i64: 1, 64>}, {pipeline_mode = #tpu.pipeline_mode<synchronous>, transform_indices = @transform_13, window_bounds = array<i64: 3, 64, 64>}, {pipeline_mode = #tpu.pipeline_mode<synchronous>, transform_indices = @transform_14, window_bounds = array<i64: 1, 64>}, {pipeline_mode = #tpu.pipeline_mode<synchronous>, transform_indices = @transform_15, window_bounds = array<i64: 1, 64>}, {pipeline_mode = #tpu.pipeline_mode<synchronous>, transform_indices = @transform_16, window_bounds = array<i64: 1, 64>}, {transform_indices = @transform_17, window_bounds = array<i64: 2, 2>}, {transform_indices = @transform_18, window_bounds = array<i64: 2, 1>}, {pipeline_mode = #tpu.pipeline_mode<synchronous>, transform_indices = @transform_19, window_bounds = array<i64: 2, 4>}, {pipeline_mode = #tpu.pipeline_mode<synchronous>, transform_indices = @transform_20, window_bounds = array<i64: 1, 4>}, {transform_indices = @transform_21, window_bounds = array<i64: 1, 1, 4>}]} {
    %c0 = arith.constant 0 : index
    %c0_0 = arith.constant 0 : index
    %c0_1 = arith.constant 0 : index
    %0 = vector.load %arg1[%c0, %c0_0, %c0_1] : memref<1x23x80xf32, #tpu.memory_space<vmem>>, vector<1x23x80xf32>
    %1 = vector.shape_cast %0 : vector<1x23x80xf32> to vector<23x80xf32>
    %c0_2 = arith.constant 0 : index
    %c0_3 = arith.constant 0 : index
    %2 = vector.load %arg2[%c0_2, %c0_3] : memref<80x64xf32, #tpu.memory_space<vmem>>, vector<80x64xf32>
    %cst = arith.constant dense<0.000000e+00> : vector<23x64xf32>
    %3 = tpu.matmul %1, %2, %cst {dimension_numbers = #tpu.dot_dimension_numbers<[1], [0], [0], [1], [0, 0, 1, 1], [], []>} : vector<23x80xf32>, vector<80x64xf32>, vector<23x64xf32> -> vector<23x64xf32>
    %c0_4 = arith.constant 0 : index
    %c0_5 = arith.constant 0 : index
    %4 = vector.load %arg3[%c0_4, %c0_5] : memref<1x64xf32, #tpu.memory_space<vmem>>, vector<1x64xf32>
    %5 = vector.broadcast %4 : vector<1x64xf32> to vector<23x64xf32>
    %6 = arith.addf %3, %5 : vector<23x64xf32>
    %cst_6 = arith.constant 0.000000e+00 : f32
    %7 = vector.broadcast %cst_6 : f32 to vector<23x64xf32>
    %8 = arith.maximumf %6, %7 : vector<23x64xf32>
    %c0_7 = arith.constant 0 : index
    %c0_8 = arith.constant 0 : index
    %9 = vector.load %arg4[%c0_7, %c0_8] : memref<1x64xf32, #tpu.memory_space<vmem>>, vector<1x64xf32>
    %10 = vector.broadcast %9 : vector<1x64xf32> to vector<23x64xf32>
    %11 = arith.mulf %8, %10 : vector<23x64xf32>
    %c0_9 = arith.constant 0 : index
    %c0_10 = arith.constant 0 : index
    %12 = vector.load %arg5[%c0_9, %c0_10] : memref<1x64xf32, #tpu.memory_space<vmem>>, vector<1x64xf32>
    %13 = vector.broadcast %12 : vector<1x64xf32> to vector<23x64xf32>
    %14 = arith.addf %11, %13 : vector<23x64xf32>
    %c0_11 = arith.constant 0 : index
    %c0_12 = arith.constant 0 : index
    %15 = vector.load %arg23[%c0_11, %c0_12] : memref<23x64xf32, #tpu.memory_space<vmem>>, vector<23x64xf32>
    tpu.vector_store %arg23[%c0_11, %c0_12], %14 {strides = array<i32>} : memref<23x64xf32, #tpu.memory_space<vmem>>, vector<23x64xf32>,
    %cst_13 = arith.constant 0.000000e+00 : f32
    %16 = vector.broadcast %cst_13 : f32 to vector<11x128xf32>
    %c0_14 = arith.constant 0 : index
    %c0_15 = arith.constant 0 : index
    %17 = tpu.strided_load %arg23[%c0_14, %c0_15] {strides = array<i32: 2, 1>} : memref<23x64xf32, #tpu.memory_space<vmem>>, vector<11x64xf32>
    %c0_16 = arith.constant 0 : index
    %c0_17 = arith.constant 0 : index
    %c0_18 = arith.constant 0 : index
    %18 = vector.load %arg6[%c0_16, %c0_17, %c0_18] : memref<3x64x128xf32, #tpu.memory_space<vmem>>, vector<1x64x128xf32>
    %19 = vector.shape_cast %18 : vector<1x64x128xf32> to vector<64x128xf32>
    %cst_19 = arith.constant dense<0.000000e+00> : vector<11x128xf32>
    %20 = tpu.matmul %17, %19, %cst_19 {dimension_numbers = #tpu.dot_dimension_numbers<[1], [0], [0], [1], [0, 0, 1, 1], [], []>} : vector<11x64xf32>, vector<64x128xf32>, vector<11x128xf32> -> vector<11x128xf32>
    %21 = arith.addf %16, %20 : vector<11x128xf32>
    %c1 = arith.constant 1 : index
    %c0_20 = arith.constant 0 : index
    %22 = tpu.strided_load %arg23[%c1, %c0_20] {strides = array<i32: 2, 1>} : memref<23x64xf32, #tpu.memory_space<vmem>>, vector<11x64xf32>
    %c1_21 = arith.constant 1 : index
    %c0_22 = arith.constant 0 : index
    %c0_23 = arith.constant 0 : index
    %23 = vector.load %arg6[%c1_21, %c0_22, %c0_23] : memref<3x64x128xf32, #tpu.memory_space<vmem>>, vector<1x64x128xf32>
    %24 = vector.shape_cast %23 : vector<1x64x128xf32> to vector<64x128xf32>
    %cst_24 = arith.constant dense<0.000000e+00> : vector<11x128xf32>
    %25 = tpu.matmul %22, %24, %cst_24 {dimension_numbers = #tpu.dot_dimension_numbers<[1], [0], [0], [1], [0, 0, 1, 1], [], []>} : vector<11x64xf32>, vector<64x128xf32>, vector<11x128xf32> -> vector<11x128xf32>
    %26 = arith.addf %21, %25 : vector<11x128xf32>
    %c2 = arith.constant 2 : index
    %c0_25 = arith.constant 0 : index
    %27 = tpu.strided_load %arg23[%c2, %c0_25] {strides = array<i32: 2, 1>} : memref<23x64xf32, #tpu.memory_space<vmem>>, vector<11x64xf32>
    %c2_26 = arith.constant 2 : index
    %c0_27 = arith.constant 0 : index
    %c0_28 = arith.constant 0 : index
    %28 = vector.load %arg6[%c2_26, %c0_27, %c0_28] : memref<3x64x128xf32, #tpu.memory_space<vmem>>, vector<1x64x128xf32>
    %29 = vector.shape_cast %28 : vector<1x64x128xf32> to vector<64x128xf32>
    %cst_29 = arith.constant dense<0.000000e+00> : vector<11x128xf32>
    %30 = tpu.matmul %27, %29, %cst_29 {dimension_numbers = #tpu.dot_dimension_numbers<[1], [0], [0], [1], [0, 0, 1, 1], [], []>} : vector<11x64xf32>, vector<64x128xf32>, vector<11x128xf32> -> vector<11x128xf32>
    %31 = arith.addf %26, %30 : vector<11x128xf32>
    %c0_30 = arith.constant 0 : index
    %c0_31 = arith.constant 0 : index
    %32 = vector.load %arg7[%c0_30, %c0_31] : memref<1x128xf32, #tpu.memory_space<vmem>>, vector<1x128xf32>
    %33 = vector.broadcast %32 : vector<1x128xf32> to vector<11x128xf32>
    %34 = arith.addf %31, %33 : vector<11x128xf32>
    %cst_32 = arith.constant 0.000000e+00 : f32
    %35 = vector.broadcast %cst_32 : f32 to vector<11x128xf32>
    %36 = arith.maximumf %34, %35 : vector<11x128xf32>
    %c0_33 = arith.constant 0 : index
    %c0_34 = arith.constant 0 : index
    %37 = vector.load %arg8[%c0_33, %c0_34] : memref<1x128xf32, #tpu.memory_space<vmem>>, vector<1x128xf32>
    %38 = vector.broadcast %37 : vector<1x128xf32> to vector<11x128xf32>
    %39 = arith.mulf %36, %38 : vector<11x128xf32>
    %c0_35 = arith.constant 0 : index
    %c0_36 = arith.constant 0 : index
    %40 = vector.load %arg9[%c0_35, %c0_36] : memref<1x128xf32, #tpu.memory_space<vmem>>, vector<1x128xf32>
    %41 = vector.broadcast %40 : vector<1x128xf32> to vector<11x128xf32>
    %42 = arith.addf %39, %41 : vector<11x128xf32>
    %c0_37 = arith.constant 0 : index
    %c0_38 = arith.constant 0 : index
    %43 = vector.load %arg24[%c0_37, %c0_38] : memref<11x128xf32, #tpu.memory_space<vmem>>, vector<11x128xf32>
    tpu.vector_store %arg24[%c0_37, %c0_38], %42 {strides = array<i32>} : memref<11x128xf32, #tpu.memory_space<vmem>>, vector<11x128xf32>,
    %cst_39 = arith.constant 0.000000e+00 : f32
    %44 = vector.broadcast %cst_39 : f32 to vector<5x64xf32>
    %c0_40 = arith.constant 0 : index
    %c0_41 = arith.constant 0 : index
    %45 = tpu.strided_load %arg24[%c0_40, %c0_41] {strides = array<i32: 2, 1>} : memref<11x128xf32, #tpu.memory_space<vmem>>, vector<5x128xf32>
    %c0_42 = arith.constant 0 : index
    %c0_43 = arith.constant 0 : index
    %c0_44 = arith.constant 0 : index
    %46 = vector.load %arg10[%c0_42, %c0_43, %c0_44] : memref<3x128x64xf32, #tpu.memory_space<vmem>>, vector<1x128x64xf32>
    %47 = vector.shape_cast %46 : vector<1x128x64xf32> to vector<128x64xf32>
    %cst_45 = arith.constant dense<0.000000e+00> : vector<5x64xf32>
    %48 = tpu.matmul %45, %47, %cst_45 {dimension_numbers = #tpu.dot_dimension_numbers<[1], [0], [0], [1], [0, 0, 1, 1], [], []>} : vector<5x128xf32>, vector<128x64xf32>, vector<5x64xf32> -> vector<5x64xf32>
    %49 = arith.addf %44, %48 : vector<5x64xf32>
    %c1_46 = arith.constant 1 : index
    %c0_47 = arith.constant 0 : index
    %50 = tpu.strided_load %arg24[%c1_46, %c0_47] {strides = array<i32: 2, 1>} : memref<11x128xf32, #tpu.memory_space<vmem>>, vector<5x128xf32>
    %c1_48 = arith.constant 1 : index
    %c0_49 = arith.constant 0 : index
    %c0_50 = arith.constant 0 : index
    %51 = vector.load %arg10[%c1_48, %c0_49, %c0_50] : memref<3x128x64xf32, #tpu.memory_space<vmem>>, vector<1x128x64xf32>
    %52 = vector.shape_cast %51 : vector<1x128x64xf32> to vector<128x64xf32>
    %cst_51 = arith.constant dense<0.000000e+00> : vector<5x64xf32>
    %53 = tpu.matmul %50, %52, %cst_51 {dimension_numbers = #tpu.dot_dimension_numbers<[1], [0], [0], [1], [0, 0, 1, 1], [], []>} : vector<5x128xf32>, vector<128x64xf32>, vector<5x64xf32> -> vector<5x64xf32>
    %54 = arith.addf %49, %53 : vector<5x64xf32>
    %c2_52 = arith.constant 2 : index
    %c0_53 = arith.constant 0 : index
    %55 = tpu.strided_load %arg24[%c2_52, %c0_53] {strides = array<i32: 2, 1>} : memref<11x128xf32, #tpu.memory_space<vmem>>, vector<5x128xf32>
    %c2_54 = arith.constant 2 : index
    %c0_55 = arith.constant 0 : index
    %c0_56 = arith.constant 0 : index
    %56 = vector.load %arg10[%c2_54, %c0_55, %c0_56] : memref<3x128x64xf32, #tpu.memory_space<vmem>>, vector<1x128x64xf32>
    %57 = vector.shape_cast %56 : vector<1x128x64xf32> to vector<128x64xf32>
    %cst_57 = arith.constant dense<0.000000e+00> : vector<5x64xf32>
    %58 = tpu.matmul %55, %57, %cst_57 {dimension_numbers = #tpu.dot_dimension_numbers<[1], [0], [0], [1], [0, 0, 1, 1], [], []>} : vector<5x128xf32>, vector<128x64xf32>, vector<5x64xf32> -> vector<5x64xf32>
    %59 = arith.addf %54, %58 : vector<5x64xf32>
    %c0_58 = arith.constant 0 : index
    %c0_59 = arith.constant 0 : index
    %60 = vector.load %arg11[%c0_58, %c0_59] : memref<1x64xf32, #tpu.memory_space<vmem>>, vector<1x64xf32>
    %61 = vector.broadcast %60 : vector<1x64xf32> to vector<5x64xf32>
    %62 = arith.addf %59, %61 : vector<5x64xf32>
    %cst_60 = arith.constant 0.000000e+00 : f32
    %63 = vector.broadcast %cst_60 : f32 to vector<5x64xf32>
    %64 = arith.maximumf %62, %63 : vector<5x64xf32>
    %c0_61 = arith.constant 0 : index
    %c0_62 = arith.constant 0 : index
    %65 = vector.load %arg12[%c0_61, %c0_62] : memref<1x64xf32, #tpu.memory_space<vmem>>, vector<1x64xf32>
    %66 = vector.broadcast %65 : vector<1x64xf32> to vector<5x64xf32>
    %67 = arith.mulf %64, %66 : vector<5x64xf32>
    %c0_63 = arith.constant 0 : index
    %c0_64 = arith.constant 0 : index
    %68 = vector.load %arg13[%c0_63, %c0_64] : memref<1x64xf32, #tpu.memory_space<vmem>>, vector<1x64xf32>
    %69 = vector.broadcast %68 : vector<1x64xf32> to vector<5x64xf32>
    %70 = arith.addf %67, %69 : vector<5x64xf32>
    %c0_65 = arith.constant 0 : index
    %c0_66 = arith.constant 0 : index
    %71 = vector.load %arg25[%c0_65, %c0_66] : memref<5x64xf32, #tpu.memory_space<vmem>>, vector<5x64xf32>
    tpu.vector_store %arg25[%c0_65, %c0_66], %70 {strides = array<i32>} : memref<5x64xf32, #tpu.memory_space<vmem>>, vector<5x64xf32>,
    %cst_67 = arith.constant 0.000000e+00 : f32
    %72 = vector.broadcast %cst_67 : f32 to vector<2x64xf32>
    %c0_68 = arith.constant 0 : index
    %c0_69 = arith.constant 0 : index
    %73 = tpu.strided_load %arg25[%c0_68, %c0_69] {strides = array<i32: 2, 1>} : memref<5x64xf32, #tpu.memory_space<vmem>>, vector<2x64xf32>
    %c0_70 = arith.constant 0 : index
    %c0_71 = arith.constant 0 : index
    %c0_72 = arith.constant 0 : index
    %74 = vector.load %arg14[%c0_70, %c0_71, %c0_72] : memref<3x64x64xf32, #tpu.memory_space<vmem>>, vector<1x64x64xf32>
    %75 = vector.shape_cast %74 : vector<1x64x64xf32> to vector<64x64xf32>
    %cst_73 = arith.constant dense<0.000000e+00> : vector<2x64xf32>
    %76 = tpu.matmul %73, %75, %cst_73 {dimension_numbers = #tpu.dot_dimension_numbers<[1], [0], [0], [1], [0, 0, 1, 1], [], []>} : vector<2x64xf32>, vector<64x64xf32>, vector<2x64xf32> -> vector<2x64xf32>
    %77 = arith.addf %72, %76 : vector<2x64xf32>
    %c1_74 = arith.constant 1 : index
    %c0_75 = arith.constant 0 : index
    %78 = tpu.strided_load %arg25[%c1_74, %c0_75] {strides = array<i32: 2, 1>} : memref<5x64xf32, #tpu.memory_space<vmem>>, vector<2x64xf32>
    %c1_76 = arith.constant 1 : index
    %c0_77 = arith.constant 0 : index
    %c0_78 = arith.constant 0 : index
    %79 = vector.load %arg14[%c1_76, %c0_77, %c0_78] : memref<3x64x64xf32, #tpu.memory_space<vmem>>, vector<1x64x64xf32>
    %80 = vector.shape_cast %79 : vector<1x64x64xf32> to vector<64x64xf32>
    %cst_79 = arith.constant dense<0.000000e+00> : vector<2x64xf32>
    %81 = tpu.matmul %78, %80, %cst_79 {dimension_numbers = #tpu.dot_dimension_numbers<[1], [0], [0], [1], [0, 0, 1, 1], [], []>} : vector<2x64xf32>, vector<64x64xf32>, vector<2x64xf32> -> vector<2x64xf32>
    %82 = arith.addf %77, %81 : vector<2x64xf32>
    %c2_80 = arith.constant 2 : index
    %c0_81 = arith.constant 0 : index
    %83 = tpu.strided_load %arg25[%c2_80, %c0_81] {strides = array<i32: 2, 1>} : memref<5x64xf32, #tpu.memory_space<vmem>>, vector<2x64xf32>
    %c2_82 = arith.constant 2 : index
    %c0_83 = arith.constant 0 : index
    %c0_84 = arith.constant 0 : index
    %84 = vector.load %arg14[%c2_82, %c0_83, %c0_84] : memref<3x64x64xf32, #tpu.memory_space<vmem>>, vector<1x64x64xf32>
    %85 = vector.shape_cast %84 : vector<1x64x64xf32> to vector<64x64xf32>
    %cst_85 = arith.constant dense<0.000000e+00> : vector<2x64xf32>
    %86 = tpu.matmul %83, %85, %cst_85 {dimension_numbers = #tpu.dot_dimension_numbers<[1], [0], [0], [1], [0, 0, 1, 1], [], []>} : vector<2x64xf32>, vector<64x64xf32>, vector<2x64xf32> -> vector<2x64xf32>
    %87 = arith.addf %82, %86 : vector<2x64xf32>
    %c0_86 = arith.constant 0 : index
    %c0_87 = arith.constant 0 : index
    %88 = vector.load %arg15[%c0_86, %c0_87] : memref<1x64xf32, #tpu.memory_space<vmem>>, vector<1x64xf32>
    %89 = vector.broadcast %88 : vector<1x64xf32> to vector<2x64xf32>
    %90 = arith.addf %87, %89 : vector<2x64xf32>
    %cst_88 = arith.constant 0.000000e+00 : f32
    %91 = vector.broadcast %cst_88 : f32 to vector<2x64xf32>
    %92 = arith.maximumf %90, %91 : vector<2x64xf32>
    %c0_89 = arith.constant 0 : index
    %c0_90 = arith.constant 0 : index
    %93 = vector.load %arg16[%c0_89, %c0_90] : memref<1x64xf32, #tpu.memory_space<vmem>>, vector<1x64xf32>
    %94 = vector.broadcast %93 : vector<1x64xf32> to vector<2x64xf32>
    %95 = arith.mulf %92, %94 : vector<2x64xf32>
    %c0_91 = arith.constant 0 : index
    %c0_92 = arith.constant 0 : index
    %96 = vector.load %arg17[%c0_91, %c0_92] : memref<1x64xf32, #tpu.memory_space<vmem>>, vector<1x64xf32>
    %97 = vector.broadcast %96 : vector<1x64xf32> to vector<2x64xf32>
    %98 = arith.addf %95, %97 : vector<2x64xf32>
    %99 = vector.extract_strided_slice %98 {offsets = [0, 0], sizes = [1, 64], strides = [1, 1]} : vector<2x64xf32> to vector<1x64xf32>
    %100 = vector.extract_strided_slice %98 {offsets = [1, 0], sizes = [1, 64], strides = [1, 1]} : vector<2x64xf32> to vector<1x64xf32>
    %c0_93 = arith.constant 0 : index
    %c0_94 = arith.constant 0 : index
    %101 = memref.load %arg18[%c0_93, %c0_94] : memref<2x2xf32, #tpu.memory_space<smem>>
    %102 = vector.broadcast %101 : f32 to vector<1x64xf32>
    %103 = arith.mulf %99, %102 : vector<1x64xf32>
    %c1_95 = arith.constant 1 : index
    %c0_96 = arith.constant 0 : index
    %104 = memref.load %arg18[%c1_95, %c0_96] : memref<2x2xf32, #tpu.memory_space<smem>>
    %105 = vector.broadcast %104 : f32 to vector<1x64xf32>
    %106 = arith.mulf %100, %105 : vector<1x64xf32>
    %107 = arith.addf %103, %106 : vector<1x64xf32>
    %c0_97 = arith.constant 0 : index
    %c0_98 = arith.constant 0 : index
    %108 = memref.load %arg19[%c0_97, %c0_98] : memref<2x1xf32, #tpu.memory_space<smem>>
    %109 = math.tanh %107 : vector<1x64xf32>
    %110 = vector.broadcast %108 : f32 to vector<1x64xf32>
    %111 = arith.mulf %110, %109 : vector<1x64xf32>
    %c0_99 = arith.constant 0 : index
    %c1_100 = arith.constant 1 : index
    %112 = memref.load %arg18[%c0_99, %c1_100] : memref<2x2xf32, #tpu.memory_space<smem>>
    %113 = vector.broadcast %112 : f32 to vector<1x64xf32>
    %114 = arith.mulf %99, %113 : vector<1x64xf32>
    %c1_101 = arith.constant 1 : index
    %c1_102 = arith.constant 1 : index
    %115 = memref.load %arg18[%c1_101, %c1_102] : memref<2x2xf32, #tpu.memory_space<smem>>
    %116 = vector.broadcast %115 : f32 to vector<1x64xf32>
    %117 = arith.mulf %100, %116 : vector<1x64xf32>
    %118 = arith.addf %114, %117 : vector<1x64xf32>
    %c1_103 = arith.constant 1 : index
    %c0_104 = arith.constant 0 : index
    %119 = memref.load %arg19[%c1_103, %c0_104] : memref<2x1xf32, #tpu.memory_space<smem>>
    %120 = math.tanh %118 : vector<1x64xf32>
    %121 = vector.broadcast %119 : f32 to vector<1x64xf32>
    %122 = arith.mulf %121, %120 : vector<1x64xf32>
    %123 = arith.addf %111, %122 : vector<1x64xf32>
    %cst_105 = arith.constant dense<0xFF800000> : vector<1xf32>
    %124 = vector.multi_reduction <maximumf>, %123, %cst_105 [1] : vector<1x64xf32> to vector<1xf32>
    %125 = vector.shape_cast %124 : vector<1xf32> to vector<1x1xf32>
    %126 = vector.broadcast %125 : vector<1x1xf32> to vector<1x64xf32>
    %127 = arith.subf %123, %126 : vector<1x64xf32>
    %128 = math.exp %127 : vector<1x64xf32>
    %cst_106 = arith.constant dense<0.000000e+00> : vector<1xf32>
    %129 = vector.multi_reduction <add>, %128, %cst_106 [1] : vector<1x64xf32> to vector<1xf32>
    %130 = vector.shape_cast %129 : vector<1xf32> to vector<1x1xf32>
    %131 = tpu.reciprocal %130 {approx = true} : vector<1x1xf32> -> vector<1x1xf32>
    %132 = vector.broadcast %131 : vector<1x1xf32> to vector<1x64xf32>
    %133 = arith.mulf %128, %132 : vector<1x64xf32>
    %c0_107 = arith.constant 0 : index
    %c0_108 = arith.constant 0 : index
    %134 = vector.load %arg21[%c0_107, %c0_108] : memref<1x4xf32, #tpu.memory_space<vmem>>, vector<1x4xf32>
    %135 = arith.mulf %99, %133 : vector<1x64xf32>
    %cst_109 = arith.constant dense<0.000000e+00> : vector<1xf32>
    %136 = vector.multi_reduction <add>, %135, %cst_109 [1] : vector<1x64xf32> to vector<1xf32>
    %137 = vector.shape_cast %136 : vector<1xf32> to vector<1x1xf32>
    %c0_110 = arith.constant 0 : index
    %c0_111 = arith.constant 0 : index
    %138 = vector.load %arg20[%c0_110, %c0_111] : memref<2x4xf32, #tpu.memory_space<vmem>>, vector<1x4xf32>
    %139 = vector.broadcast %137 : vector<1x1xf32> to vector<1x4xf32>
    %140 = arith.mulf %138, %139 : vector<1x4xf32>
    %141 = arith.addf %134, %140 : vector<1x4xf32>
    %142 = arith.mulf %100, %133 : vector<1x64xf32>
    %cst_112 = arith.constant dense<0.000000e+00> : vector<1xf32>
    %143 = vector.multi_reduction <add>, %142, %cst_112 [1] : vector<1x64xf32> to vector<1xf32>
    %144 = vector.shape_cast %143 : vector<1xf32> to vector<1x1xf32>
    %c1_113 = arith.constant 1 : index
    %c0_114 = arith.constant 0 : index
    %145 = vector.load %arg20[%c1_113, %c0_114] : memref<2x4xf32, #tpu.memory_space<vmem>>, vector<1x4xf32>
    %146 = vector.broadcast %144 : vector<1x1xf32> to vector<1x4xf32>
    %147 = arith.mulf %145, %146 : vector<1x4xf32>
    %148 = arith.addf %141, %147 : vector<1x4xf32>
    %c0_115 = arith.constant 0 : index
    %c0_116 = arith.constant 0 : index
    %c0_117 = arith.constant 0 : index
    %149 = vector.load %arg22[%c0_115, %c0_116, %c0_117] : memref<1x1x4xf32, #tpu.memory_space<vmem>>, vector<1x1x4xf32>
    %150 = vector.shape_cast %149 : vector<1x1x4xf32> to vector<1x4xf32>
    %151 = vector.shape_cast %148 : vector<1x4xf32> to vector<1x1x4xf32>
    tpu.vector_store %arg22[%c0_115, %c0_116, %c0_117], %151 {strides = array<i32>} : memref<1x1x4xf32, #tpu.memory_space<vmem>>, vector<1x1x4xf32>,
    return
  }
  func.func @transform_0(%arg0: i32) -> (i32, i32, i32) {
    %c0_i32 = arith.constant 0 : i32
    %c0_i32_0 = arith.constant 0 : i32
    %c0_i32_1 = arith.constant 0 : i32
    return %arg0, %c0_i32, %c0_i32_0 : i32, i32, i32
  }
  func.func @transform_1(%arg0: i32) -> (i32, i32) {
    %c0_i32 = arith.constant 0 : i32
    %c0_i32_0 = arith.constant 0 : i32
    %c0_i32_1 = arith.constant 0 : i32
    return %c0_i32, %c0_i32_0 : i32, i32
  }
  func.func @transform_2(%arg0: i32) -> (i32, i32) {
    %c0_i32 = arith.constant 0 : i32
    %c0_i32_0 = arith.constant 0 : i32
    %c0_i32_1 = arith.constant 0 : i32
    return %c0_i32, %c0_i32_0 : i32, i32
  }
  func.func @transform_3(%arg0: i32) -> (i32, i32) {
    %c0_i32 = arith.constant 0 : i32
    %c0_i32_0 = arith.constant 0 : i32
    %c0_i32_1 = arith.constant 0 : i32
    return %c0_i32, %c0_i32_0 : i32, i32
  }
  func.func @transform_4(%arg0: i32) -> (i32, i32) {
    %c0_i32 = arith.constant 0 : i32
    %c0_i32_0 = arith.constant 0 : i32
    %c0_i32_1 = arith.constant 0 : i32
    return %c0_i32, %c0_i32_0 : i32, i32
  }
  func.func @transform_5(%arg0: i32) -> (i32, i32, i32) {
    %c0_i32 = arith.constant 0 : i32
    %c0_i32_0 = arith.constant 0 : i32
    %c0_i32_1 = arith.constant 0 : i32
    %c0_i32_2 = arith.constant 0 : i32
    return %c0_i32, %c0_i32_0, %c0_i32_1 : i32, i32, i32
  }
  func.func @transform_6(%arg0: i32) -> (i32, i32) {
    %c0_i32 = arith.constant 0 : i32
    %c0_i32_0 = arith.constant 0 : i32
    %c0_i32_1 = arith.constant 0 : i32
    return %c0_i32, %c0_i32_0 : i32, i32
  }
  func.func @transform_7(%arg0: i32) -> (i32, i32) {
    %c0_i32 = arith.constant 0 : i32
    %c0_i32_0 = arith.constant 0 : i32
    %c0_i32_1 = arith.constant 0 : i32
    return %c0_i32, %c0_i32_0 : i32, i32
  }
  func.func @transform_8(%arg0: i32) -> (i32, i32) {
    %c0_i32 = arith.constant 0 : i32
    %c0_i32_0 = arith.constant 0 : i32
    %c0_i32_1 = arith.constant 0 : i32
    return %c0_i32, %c0_i32_0 : i32, i32
  }
  func.func @transform_9(%arg0: i32) -> (i32, i32, i32) {
    %c0_i32 = arith.constant 0 : i32
    %c0_i32_0 = arith.constant 0 : i32
    %c0_i32_1 = arith.constant 0 : i32
    %c0_i32_2 = arith.constant 0 : i32
    return %c0_i32, %c0_i32_0, %c0_i32_1 : i32, i32, i32
  }
  func.func @transform_10(%arg0: i32) -> (i32, i32) {
    %c0_i32 = arith.constant 0 : i32
    %c0_i32_0 = arith.constant 0 : i32
    %c0_i32_1 = arith.constant 0 : i32
    return %c0_i32, %c0_i32_0 : i32, i32
  }
  func.func @transform_11(%arg0: i32) -> (i32, i32) {
    %c0_i32 = arith.constant 0 : i32
    %c0_i32_0 = arith.constant 0 : i32
    %c0_i32_1 = arith.constant 0 : i32
    return %c0_i32, %c0_i32_0 : i32, i32
  }
  func.func @transform_12(%arg0: i32) -> (i32, i32) {
    %c0_i32 = arith.constant 0 : i32
    %c0_i32_0 = arith.constant 0 : i32
    %c0_i32_1 = arith.constant 0 : i32
    return %c0_i32, %c0_i32_0 : i32, i32
  }
  func.func @transform_13(%arg0: i32) -> (i32, i32, i32) {
    %c0_i32 = arith.constant 0 : i32
    %c0_i32_0 = arith.constant 0 : i32
    %c0_i32_1 = arith.constant 0 : i32
    %c0_i32_2 = arith.constant 0 : i32
    return %c0_i32, %c0_i32_0, %c0_i32_1 : i32, i32, i32
  }
  func.func @transform_14(%arg0: i32) -> (i32, i32) {
    %c0_i32 = arith.constant 0 : i32
    %c0_i32_0 = arith.constant 0 : i32
    %c0_i32_1 = arith.constant 0 : i32
    return %c0_i32, %c0_i32_0 : i32, i32
  }
  func.func @transform_15(%arg0: i32) -> (i32, i32) {
    %c0_i32 = arith.constant 0 : i32
    %c0_i32_0 = arith.constant 0 : i32
    %c0_i32_1 = arith.constant 0 : i32
    return %c0_i32, %c0_i32_0 : i32, i32
  }
  func.func @transform_16(%arg0: i32) -> (i32, i32) {
    %c0_i32 = arith.constant 0 : i32
    %c0_i32_0 = arith.constant 0 : i32
    %c0_i32_1 = arith.constant 0 : i32
    return %c0_i32, %c0_i32_0 : i32, i32
  }
  func.func @transform_17(%arg0: i32) -> (i32, i32) {
    %c0_i32 = arith.constant 0 : i32
    %c0_i32_0 = arith.constant 0 : i32
    %c0_i32_1 = arith.constant 0 : i32
    return %c0_i32, %c0_i32_0 : i32, i32
  }
  func.func @transform_18(%arg0: i32) -> (i32, i32) {
    %c0_i32 = arith.constant 0 : i32
    %c0_i32_0 = arith.constant 0 : i32
    %c0_i32_1 = arith.constant 0 : i32
    return %c0_i32, %c0_i32_0 : i32, i32
  }
  func.func @transform_19(%arg0: i32) -> (i32, i32) {
    %c0_i32 = arith.constant 0 : i32
    %c0_i32_0 = arith.constant 0 : i32
    %c0_i32_1 = arith.constant 0 : i32
    return %c0_i32, %c0_i32_0 : i32, i32
  }
  func.func @transform_20(%arg0: i32) -> (i32, i32) {
    %c0_i32 = arith.constant 0 : i32
    %c0_i32_0 = arith.constant 0 : i32
    %c0_i32_1 = arith.constant 0 : i32
    return %c0_i32, %c0_i32_0 : i32, i32
  }
  func.func @transform_21(%arg0: i32) -> (i32, i32, i32) {
    %c0_i32 = arith.constant 0 : i32
    %c0_i32_0 = arith.constant 0 : i32
    %c0_i32_1 = arith.constant 0 : i32
    return %arg0, %c0_i32, %c0_i32_0 : i32, i32, i32
  }
}

</mosaic_0001>

<bundles_post_ra>
// kernel: channel_filter_forward.1
= control target key start
LH: loop header
LB: loop body
LE: loop exit
PB: predicated region body
PF: predicated region fallthrough
CT: control target
= control target key end

     0   :  { %s3365_s0 = inlined_call_operand.vmem [shape: f32[2,23,80], index: 0, kind: input, shape index: {}]   ;;  %s3366_s1 = inlined_call_operand.vmem [shape: f32[80,64], index: 1, kind: input, shape index: {}]   ;;  %s3367_s2 = inlined_call_operand.vmem [shape: f32[1,64], index: 2, kind: input, shape index: {}]   ;;  %s3368_s3 = inlined_call_operand.vmem [shape: f32[1,64], index: 3, kind: input, shape index: {}]   ;;  %s3369_s4 = inlined_call_operand.vmem [shape: f32[1,64], index: 4, kind: input, shape index: {}]   ;;  %s3370_s5 = inlined_call_operand.vmem [shape: f32[3,64,128], index: 5, kind: input, shape index: {}]   ;;  %s3371_s6 = inlined_call_operand.vmem [shape: f32[1,128], index: 6, kind: input, shape index: {}]   ;;  %s3372_s7 = inlined_call_operand.vmem [shape: f32[1,128], index: 7, kind: input, shape index: {}]   ;;  %s3373_s8 = inlined_call_operand.vmem [shape: f32[1,128], index: 8, kind: input, shape index: {}]   ;;  %s3374_s9 = inlined_call_operand.vmem [shape: f32[3,128,64], index: 9, kind: input, shape index: {}]   ;;  %s3375_s10 = inlined_call_operand.vmem [shape: f32[1,64], index: 10, kind: input, shape index: {}]   ;;  %s3376_s11 = inlined_call_operand.vmem [shape: f32[1,64], index: 11, kind: input, shape index: {}]   ;;  %s3377_s12 = inlined_call_operand.vmem [shape: f32[1,64], index: 12, kind: input, shape index: {}]   ;;  %s3378_s13 = inlined_call_operand.vmem [shape: f32[3,64,64], index: 13, kind: input, shape index: {}]   ;;  %s3379_s14 = inlined_call_operand.vmem [shape: f32[1,64], index: 14, kind: input, shape index: {}]   ;;  %s3380_s15 = inlined_call_operand.vmem [shape: f32[1,64], index: 15, kind: input, shape index: {}]   ;;  %s3381_s16 = inlined_call_operand.vmem [shape: f32[1,64], index: 16, kind: input, shape index: {}]   ;;  %s3382_s17 = inlined_call_operand.vmem [shape: f32[2,2], index: 17, kind: input, shape index: {}]   ;;  %s3383_s18 = inlined_call_operand.vmem [shape: f32[2,1], index: 18, kind: input, shape index: {}]   ;;  %s3384_s19 = inlined_call_operand.vmem [shape: f32[2,4], index: 19, kind: input, shape index: {}]   ;;  %s3385_s20 = inlined_call_operand.vmem [shape: f32[1,4], index: 20, kind: input, shape index: {}]   ;;  %s3386_s21 = inlined_call_operand.hbm [shape: f32[2,1,4], index: 21, kind: output, shape index: {}]  }
   0x1   :  { %3396 = sst [smem:[#allocation17_spill]] %s3365_s0 }
   0x2   :  { %3397 = sst [smem:[#allocation18_spill]] %s3366_s1 }
   0x3   :  { %3398 = sst [smem:[#allocation19_spill]] %s3367_s2 }
   0x4   :  { %3399 = sst [smem:[#allocation20_spill]] %s3368_s3 }
   0x5   :  { %3400 = sst [smem:[#allocation21_spill]] %s3369_s4 }
   0x6   :  { %3401 = sst [smem:[#allocation22_spill]] %s3370_s5 }
   0x7   :  { %3402 = sst [smem:[#allocation23_spill]] %s3371_s6 }
   0x8   :  { %3403 = sst [smem:[#allocation24_spill]] %s3382_s17 }
   0x9   :  { %3404 = sst [smem:[#allocation25_spill]] %s3383_s18 }
   0xa   :  { %26 = vsyncpa [#allocation7], 0 }
   0xb   :  { %27 = vsyncpa [#allocation9], 0 }
   0xc   :  { %28 = vsyncpa [#allocation6], 0 }
   0xd   :  { %30 = vsyncpa [#allocation6 + $0x1], 0  ;;  %s2794_s2 = smov 0   ;;  %s2796_s25 = smov 0  }
   0xe   :  { %s2798_s26 = smov 0   ;;  %s2800_s27 = smov 0  }
   0xf LB: > { %3405 = sst [smem:[#allocation14_spill]] %s2672_s26  ;;  %s2815_s3 = sadd.s32 4294967295, %s2676_s27   ;;  %s2676_s27 = sphi %s2800_s27, %s3429_s27   ;;  %s2672_s26 = sphi %s2798_s26, %s3434_s26   ;;  %s2668_s25 = sphi %s2796_s25, %s3433_s25   ;;  %s2664_s2 = sphi %s2794_s2, %s3432_s2  }
  0x10   : > { %s1856_s28 = sadd.s32 4294967294, %s2676_s27   ;;  %s2819_s29 = sadd.s32 1, %s2676_s27  }
  0x11   : > { %3406 = sst [smem:[#allocation15_spill]] %s2819_s29  ;;  %s489_s0 = sadd.s32 1, %s2672_s26 }
  0x12   : > { %s486_s4 = ssub.s32 %s2676_s27, %s2819_s29  ;;  %p499_p0 = scmp.ne.s32.totalorder %s2672_s26, %s2668_s25 }
  0x13   : > { %p487_p1 = scmp.eq.s32.totalorder %s486_s4, 0  ;;  %p500_p2 = scmp.eq.s32.totalorder %s2815_s3, 1 }
  0x14   : > { %p505_p3 = scmp.ne.s32.totalorder %s2668_s25, %s2664_s2  ;;  %p506_p4 = scmp.eq.s32.totalorder %s1856_s28, 1 }
  0x15   : > { %s2830_s30 = scalar_select %p487_p1, %s2672_s26, %s489_s0  }
  0x16   : > { %p2832_p5 = por %p500_p2, %p499_p0  ;;  %p2836_p6 = por %p506_p4, %p505_p3 }
  0x17   : > { %3407 = sst [smem:[#allocation16_spill]] %s2830_s30  ;;  %p1857_p7 = scmp.ge.s32.totalorder %s2676_s27, 1 }
  0x18   : > { %s3408_s5 = scalar_select %p2832_p5, 1, 0 }
  0x19   : > { %s3409_s22 = scalar_select %p2836_p6, 1, 0 }
  0x1a   : > { %p513_p8 = scmp.lt.s32.totalorder %s2676_s27, 3  ;;  %p3392_p9 = scmp.eq.s32.totalorder %s2815_s3, 0 }
  0x1b   : > { %s3411_s17 = sld [smem:[#allocation24_spill]]  ;;  %s3412_s18 = sld [smem:[#allocation25_spill]] }
  0x1c   : > { %p2843_p10 = pnand %p1857_p7, %p513_p8 }
  0x1e   : > { %s3410_s23 = scalar_select %p2843_p10, 1, 0 }
  0x1f   : > { %p2515_p11 = pneg %p2843_p10 }
  0x21   : > { %s574_s28 = sshll.u32 %s3411_s17, 4  ;;  %s585_s30 = sshll.u32 %s3412_s18, 4  ;;  %s575_s28 = int_to_ptr.vmem [resolvable:$true] %s574_s28  ;;  %s586_s30 = int_to_ptr.vmem [resolvable:$true] %s585_s30 }
  0x22   : > { %p2857_p12 = pnand %p3392_p9, %p2515_p11  ;;  %s2576_s29 = scalar_lea.vmem %s575_s28, 32 }
  0x23   : > { %p2577_p13 = scmp.ne.s32.totalorder %s575_s28, %s2576_s29  ;;  %p2584_p3 = scmp.lt.s32.totalorder %s575_s28, %s575_s28 }
  0x24   : > { %p2578_p0 = pneg %p2857_p12  ;;  %p2585_p4 = scmp.lt.s32.totalorder %s2576_s29, %s2576_s29 }
  0x26   : > { %p2579_p1 = pnand %p2578_p0, %p2577_p13  ;;  %p2586_p7 = por %p2585_p4, %p2584_p3 }
  0x28   : > { %p2580_p2 = pneg %p2579_p1 }
  0x2a   : > { %p2587_p8 = pnand %p2586_p7, %p2580_p2 }
  0x2c   : > { %2590 = shalt.err (!%p2587_p8)
}
  0x2d   : > { %s2678_s1 = smov [#allocation5]   ;;  %s2591_s24 = scalar_lea.vmem %s586_s30, 32 }
  0x2e   : > { %2518 = dma.vmem_to_smem (!%p2857_p12), %s575_s28, 32, %s2678_s1, [#allocation7]  }
  0x2f   : > { %p2592_p11 = scmp.ne.s32.totalorder %s586_s30, %s2591_s24  ;;  %p2599_p5 = scmp.lt.s32.totalorder %s586_s30, %s586_s30 }
  0x30   : > { %p2600_p10 = scmp.lt.s32.totalorder %s2591_s24, %s2591_s24 }
  0x31   : > { %p2594_p9 = pnand %p2592_p11, %p2578_p0 }
  0x32   : > { %p2601_p13 = por %p2600_p10, %p2599_p5 }
  0x33   : > { %p2595_p6 = pneg %p2594_p9 }
  0x35   : > { %p2602_p1 = pnand %p2601_p13, %p2595_p6 }
  0x37   : > { %2605 = shalt.err (!%p2602_p1)
}
  0x38   : > { %s2679_s0 = smov [#allocation8]   ;;  %p3414_p2 = scmp.ne.s32.totalorder %s3410_s23, 0 }
  0x39   : > { %2521 = dma.vmem_to_smem (!%p2857_p12), %s586_s30, 32, %s2679_s0, [#allocation9]  }
  0x3a   : > { %612 = sbr.rel (%p3414_p2) target bundleno = 1603 (0x643), region = 104  ;;  %p3415_p3 = scmp.eq.s32.totalorder (!%p3414_p2), %s2815_s3, 0 }
  0x41   : > { %2651 = dma.done.wait (%p3415_p3), [#allocation7], 32   ;;  %p3416_p4 = pmov %p3415_p3 }
  0x42   : > { %p3417_p9 = pmov %p3415_p3 }
  0x43   : > { %2653 = vsyncadd (%p3416_p4), [#allocation7], 4294967264 }
  0x44   : > { %2655 = dma.done.wait (%p3417_p9), [#allocation9], 32   ;;  %p3418_p5 = pmov %p3415_p3 }
  0x46   : > { %2657 = vsyncadd (%p3418_p5), [#allocation9], 4294967264 }
  0x47   : > { %622 = sfence }
  0x48   : > { %s3419_s26 = sld [smem:[#allocation18_spill]]  ;;  %v2680_v3 = vmov 0.0|0.0   ;;  %vm2681_vm0 = vmmov 0   ;;  %v2682_v6 = vmov 0.0   ;;  %p676_p6 = scmp.lt.s32.totalorder %s2815_s3, 1  ;;  %vm701_vm1 = vcmask 654336  }
  0x49   : > { %2329 = vmatprep.subr.bf16.mxu0 %v2680_v3  ;;  %2101 = vmatprep.mubr.msk.f32.mxu0 %vm2681_vm0, %v2682_v6  ;;  %s3421_s1 = sld [smem:[#allocation17_spill]]  ;;  %s3422_s29 = sld [smem:[#allocation22_spill]]  ;;  %v1896_v35 = vld [vmem:[%s3374_s9 + $0x80] sm:$0xff]  ;;  %v1897_v36 = vld [vmem:[%s3374_s9 + $0x88] sm:$0xff]  ;;  %v1898_v38 = vld [vmem:[%s3374_s9 + $0x90] sm:$0xff]  ;;  %vm814_vm2 = vcmask 523264  }
  0x4a   : > { %s677_s0 = scalar_select %p676_p6, %s2815_s3, 1  ;;  %v2393_v37 = vpack.c.bf16 %v1897_v36, %v1896_v35  ;;  %v1899_v39 = vld [vmem:[%s3374_s9 + $0x98] sm:$0xff]  ;;  %v1900_v41 = vld [vmem:[%s3374_s9 + $0xa0] sm:$0xff]  ;;  %v1901_v42 = vld [vmem:[%s3374_s9 + $0xa8] sm:$0xff]  ;;  %vm817_vm3 = vcmask 522240   ;;  %vm1423_vm4 = vcmask 520192  }
  0x4b   : > { %v2396_v40 = vpack.c.bf16 %v1899_v39, %v1898_v38  ;;  %v2399_v43 = vpack.c.bf16 %v1901_v42, %v1900_v41  ;;  %v1902_v44 = vld [vmem:[%s3374_s9 + $0xb0] sm:$0xff]  ;;  %v1903_v45 = vld [vmem:[%s3374_s9 + $0xb8] sm:$0xff]  ;;  %s3425_s17 = sld [smem:[#allocation21_spill]]  ;;  %v1137_v39 = vld [vmem:[%s3374_s9 + $0x20] sm:$0xff]  ;;  %s3426_s6 = sld [smem:[#allocation23_spill]]  ;;  %vm1730_vm5 = vcmask 516096  }
  0x4c   : > { %s2504_s18 = smul.u32 24, %s677_s0  ;;  %v2402_v46 = vpack.c.bf16 %v1903_v45, %v1902_v44  ;;  %v1135_v35 = vld [vmem:[%s3374_s9 + $0x10] sm:$0xff]  ;;  %v1136_v36 = vld [vmem:[%s3374_s9 + $0x18] sm:$0xff]  ;;  %v1904_v45 = vld [vmem:[%s3374_s9 + $0xc0] sm:$0xff]  ;;  %s1953_s23 = sld [smem:[#allocation5 + $0x80]]  ;;  %vm1754_vm6 = vcmask 517121  }
  0x4d   : > { %v2420_v38 = vpack.c.bf16 %v1136_v36, %v1135_v35  ;;  %v1139_v42 = vld [vmem:[%s3374_s9 + $0x30] sm:$0xff]  ;;  %v1921_v35 = vld [vmem:[%s3374_s9 + $0x148] sm:$0xff]  ;;  %s1711_s30 = sld [smem:[#allocation8]]  ;;  %vm1764_vm7 = vcmask 24576   ;;  %p3427_p12 = scmp.ne.s32.totalorder %s3408_s5, 0 }
  0x4e   : > { %s3420_s4 = smov %s3419_s26  ;;  %v684_v0 = vld [vmem:[%s3419_s26] sm:$0xff]  ;;  %s3424_s26 = sld [smem:[#allocation20_spill]] }
  0x4f   : > { %v685_v1 = vld [vmem:[%s3420_s4 + $0x8] sm:$0xff]  ;;  %v686_v2 = vld [vmem:[%s3420_s4 + $0x10] sm:$0xff]  ;;  %v687_v5 = vld [vmem:[%s3420_s4 + $0x18] sm:$0xff]  ;;  %s680_s24 = scalar_lea.vmem %s3421_s1, %s2504_s18  ;;  %s3423_s18 = sld [smem:[#allocation19_spill]] }
  0x50   : > { %v2330_v4 = vpack.c.bf16 %v685_v1, %v684_v0  ;;  %v2333_v7 = vpack.c.bf16 %v687_v5, %v686_v2  ;;  %v688_v8 = vld [vmem:[%s3420_s4 + $0x20] sm:$0xff]  ;;  %v689_v9 = vld [vmem:[%s3420_s4 + $0x28] sm:$0xff]  ;;  %v690_v11 = vld [vmem:[%s3420_s4 + $0x30] sm:$0xff]  ;;  %s1955_s1 = sld [smem:[#allocation5 + $0x81]] }
  0x51   : > { %v2336_v10 = vpack.c.bf16 %v689_v9, %v688_v8  ;;  %v691_v12 = vld [vmem:[%s3420_s4 + $0x38] sm:$0xff]  ;;  %v692_v14 = vld [vmem:[%s3420_s4 + $0x40] sm:$0xff]  ;;  %v693_v15 = vld [vmem:[%s3420_s4 + $0x48] sm:$0xff]  ;;  %s1957_s4 = sshll.u32 %s2815_s3, 4  ;;  %s2683_s3 = smov [#allocation10]  }
  0x52   : > { %2331 = vmatpush3.bf16.msra.mxu0 %v2330_v4  ;;  %v2339_v13 = vpack.c.bf16 %v691_v12, %v690_v11  ;;  %v2342_v16 = vpack.c.bf16 %v693_v15, %v692_v14  ;;  %v681_v17 = vld [vmem:[%s680_s24] sm:$0xff]  ;;  %v682_v18 = vld [vmem:[%s680_s24 + $0x8] sm:$0xff]  ;;  %v683_v19 = vld [vmem:[%s680_s24 + $0x10] sm:$0x7f]  ;;  %s1701_s24 = sld [smem:[#allocation5]]  ;;  %s2610_s28 = sshll.u32 %s2683_s3, 4  ;;  %s2611_s28 = int_to_ptr.vmem [resolvable:$false] %s2610_s28 }
  0x53   : > { %2332 = vmatprep.subr.bf16.mxu0 %v2680_v3  ;;  %v1871_v20 = vld [vmem:[%s3422_s29 + $0x40] sm:$0xff]  ;;  %v1872_v21 = vld [vmem:[%s3422_s29 + $0x48] sm:$0xff]  ;;  %v1873_v23 = vld [vmem:[%s3422_s29 + $0x50] sm:$0xff] }
  0x54   : > { %v2344_v22 = vpack.c.bf16 %v1872_v21, %v1871_v20  ;;  %v1874_v24 = vld [vmem:[%s3422_s29 + $0x58] sm:$0xff]  ;;  %v1875_v26 = vld [vmem:[%s3422_s29 + $0x60] sm:$0xff]  ;;  %v1876_v27 = vld [vmem:[%s3422_s29 + $0x68] sm:$0xff] }
  0x55   : > { %v2348_v25 = vpack.c.bf16 %v1874_v24, %v1873_v23  ;;  %v2352_v28 = vpack.c.bf16 %v1876_v27, %v1875_v26  ;;  %v1877_v29 = vld [vmem:[%s3422_s29 + $0x70] sm:$0xff]  ;;  %v1878_v30 = vld [vmem:[%s3422_s29 + $0x78] sm:$0xff]  ;;  %v822_v32 = vld [vmem:[%s3422_s29] sm:$0xff] }
  0x56   : > { %2334 = vmatpush3.bf16.msra.mxu0 %v2333_v7  ;;  %2345 = vmatprep.subr.bf16.mxu1 %v2344_v22  ;;  %v2356_v31 = vpack.c.bf16 %v1878_v30, %v1877_v29  ;;  %v823_v33 = vld [vmem:[%s3422_s29 + $0x8] sm:$0xff]  ;;  %v1865_v47 = vld [vmem:[%s3423_s18] ss:$0 sm:$0xff]  ;;  %v824_v7 = vld [vmem:[%s3422_s29 + $0x10] sm:$0xff]  ;;  %s1954_s18 = sld [smem:[#allocation5 + $0x1]] }
  0x57   : > { %2335 = vmatprep.subr.bf16.mxu0 %v2680_v3  ;;  %2347 = vmatpush3.bf16.msra.mxu1 %v2344_v22  ;;  %v2360_v34 = vpack.c.bf16 %v823_v33, %v822_v32  ;;  %v1869_v51 = vld [vmem:[%s3424_s26] ss:$0 sm:$0xff]  ;;  %v825_v8 = vld [vmem:[%s3422_s29 + $0x18] sm:$0xff]  ;;  %v827_v12 = vld [vmem:[%s3422_s29 + $0x28] sm:$0xff]  ;;  %s2612_s26 = scalar_lea.vmem %s2611_s28, 32 }
  0x58   : > { %2349 = vmatprep.subr.bf16.mxu1 %v2348_v25  ;;  %v1870_v53 = vld [vmem:[%s3425_s17] ss:$0 sm:$0xff]  ;;  %v2364_v9 = vpack.c.bf16 %v825_v8, %v824_v7  ;;  %v828_v15 = vld [vmem:[%s3422_s29 + $0x30] sm:$0xff]  ;;  %v1886_v22 = vld [vmem:[%s3422_s29 + $0x98] sm:$0xff]  ;;  %s1956_s17 = sld [smem:[#allocation8 + $0x80]] }
  0x59   : > { %v826_v11 = vld [vmem:[%s3422_s29 + $0x20] sm:$0xff]  ;;  %v1885_v21 = vld [vmem:[%s3422_s29 + $0x90] sm:$0xff]  ;;  %v1888_v26 = vld [vmem:[%s3422_s29 + $0xa8] sm:$0xff] }
  0x5a   : > { %2337 = vmatpush3.bf16.msra.mxu0 %v2336_v10  ;;  %v2368_v14 = vpack.c.bf16 %v827_v12, %v826_v11  ;;  %v2380_v23 = vpack.c.bf16 %v1886_v22, %v1885_v21  ;;  %v1889_v29 = vld [vmem:[%s3422_s29 + $0xb0] sm:$0xff]  ;;  %v1890_v30 = vld [vmem:[%s3422_s29 + $0xb8] sm:$0xff]  ;;  %v1133_v32 = vld [vmem:[%s3374_s9] sm:$0xff] }
  0x5b   : > { %2338 = vmatprep.subr.bf16.mxu0 %v2680_v3  ;;  %2351 = vmatpush3.bf16.msra.mxu1 %v2348_v25  ;;  %v1887_v25 = vld [vmem:[%s3422_s29 + $0xa0] sm:$0xff]  ;;  %v1134_v33 = vld [vmem:[%s3374_s9 + $0x8] sm:$0xff] }
  0x5c   : > { %2353 = vmatprep.subr.bf16.mxu1 %v2352_v28  ;;  %v1893_v7 = vld [vmem:[%s3426_s6] ss:$0 sm:$0xff]  ;;  %v1913_v21 = vld [vmem:[%s3374_s9 + $0x108] sm:$0xff]  ;;  %s3323_s6 = scalar_lea.hbm %s3386_s21, %s1957_s4 }
  0x5d   : > { %v1894_v11 = vld [vmem:[%s3372_s7] ss:$0 sm:$0xff] }
  0x5e   : > { %2340 = vmatpush3.bf16.msra.mxu0 %v2339_v13 }
  0x5f   : > { %2341 = vmatprep.subr.bf16.mxu0 %v2680_v3  ;;  %2355 = vmatpush3.bf16.msra.mxu1 %v2352_v28  ;;  %v2384_v28 = vpack.c.bf16 %v1888_v26, %v1887_v25 }
  0x60   : > { %2357 = vmatprep.subr.bf16.mxu1 %v2356_v31 }
  0x62   : > { %2343 = vmatpush3.bf16.msra.mxu0 %v2342_v16  ;;  %v829_v16 = vld [vmem:[%s3422_s29 + $0x38] sm:$0xff] }
  0x63   : > { %2392 = vmatprep.subr.bf16.mxu0 %v2680_v3  ;;  %2359 = vmatpush3.bf16.msra.mxu1 %v2356_v31  ;;  %v2388_v31 = vpack.c.bf16 %v1890_v30, %v1889_v29  ;;  %v1917_v29 = vld [vmem:[%s3374_s9 + $0x128] sm:$0xff] }
  0x64   : > { %2361 = vmatprep.subr.bf16.mxu1 %v2360_v34 }
  0x65   : > { %2102 = vmatmul.mubr.msk.f32.vlgmr.msra.gmra.mrb[0].mxu0 %vm701_vm1, %v681_v17  ;;  %v2372_v17 = vpack.c.bf16 %v829_v16, %v828_v15 }
  0x66   : > { %2104 = vmatprep.mubr.msk.f32.mxu0 %vm2681_vm0, %v2682_v6  ;;  %2394 = vmatpush3.bf16.msra.mxu0 %v2393_v37 }
  0x67   : > { %2395 = vmatprep.subr.bf16.mxu0 %v2680_v3 }
  0x69   : > { %2105 = vmatmul.mubr.msk.f32.gmra.mrb[2].mxu0 %vm701_vm1, %v682_v18  ;;  %v1883_v18 = vld [vmem:[%s3422_s29 + $0x80] sm:$0xff] }
  0x6a   : > { %2107 = vmatprep.mubr.msk.f32.mxu0 %vm2681_vm0, %v2682_v6  ;;  %2397 = vmatpush3.bf16.msra.mxu0 %v2396_v40  ;;  %v1138_v40 = vld [vmem:[%s3374_s9 + $0x28] sm:$0xff] }
  0x6b   : > { %2398 = vmatprep.subr.bf16.mxu0 %v2680_v3  ;;  %v2423_v41 = vpack.c.bf16 %v1138_v40, %v1137_v39  ;;  %v1924_v40 = vld [vmem:[%s3374_s9 + $0x160] sm:$0xff] }
  0x6d   : > { %2108 = vmatmul.mubr.msk.f32.gmra.mrb[4].mxu0 %vm701_vm1, %v683_v19  ;;  %v1884_v19 = vld [vmem:[%s3422_s29 + $0x88] sm:$0xff] }
  0x6e   : > { %2199 = vmatprep.mubr.msk.f32.mxu0 %vm2681_vm0, %v2682_v6  ;;  %2400 = vmatpush3.bf16.msra.mxu0 %v2399_v43  ;;  %v2376_v20 = vpack.c.bf16 %v1884_v19, %v1883_v18  ;;  %v1140_v43 = vld [vmem:[%s3374_s9 + $0x38] sm:$0xff] }
  0x6f   : > { %2401 = vmatprep.subr.bf16.mxu0 %v2680_v3  ;;  %v2426_v44 = vpack.c.bf16 %v1140_v43, %v1139_v42  ;;  %v1926_v43 = vld [vmem:[%s3374_s9 + $0x170] sm:$0xff] }
  0x72   : > { %2403 = vmatpush3.bf16.msra.mxu0 %v2402_v46  ;;  %v1905_v46 = vld [vmem:[%s3374_s9 + $0xc8] sm:$0xff] }
  0x73   : > { %2404 = vmatprep.subr.bf16.mxu0 %v2680_v3 }
 0x138   : > { %v777_v48 = vpop.f32.mrb[0].mxu0 }
 0x139   : > { %v778_v49 = vadd.f32 %v1865_v47, %v777_v48  ;;  %v2103_v50 = vpop.f32.mrb[1].mxu0  ;;  %v1141_v48 = vld [vmem:[%s3374_s9 + $0x40] sm:$0xff] }
 0x13b   : > { %v791_v52 = vmax.f32 %v778_v49, 0.0  ;;  %v1142_v49 = vld [vmem:[%s3374_s9 + $0x48] sm:$0xff] }
 0x13c   : > { %v782_v54 = vpop.f32.mrb[2].mxu0  ;;  %v2429_v50 = vpack.c.bf16 %v1142_v49, %v1141_v48  ;;  %v1932_v48 = vld [vmem:[%s3378_s13 + $0x48] sm:$0xff] }
 0x13d   : > { %v801_v55 = vmul.f32 %v1869_v51, %v791_v52  ;;  %v783_v56 = vadd.f32 %v1865_v47, %v782_v54  ;;  %v2106_v57 = vpop.f32.mrb[3].mxu0  ;;  %v1907_v52 = vld [vmem:[%s3374_s9 + $0xd8] sm:$0xff]  ;;  %v1143_v54 = vld [vmem:[%s3374_s9 + $0x50] sm:$0xff] }
 0x13e   : > { %v1908_v57 = vld [vmem:[%s3374_s9 + $0xe0] sm:$0xff] }
 0x13f   : > { %v811_v58 = vadd.f32 %v1870_v53, %v801_v55  ;;  %v792_v59 = vmax.f32 %v783_v56, 0.0  ;;  %v1144_v55 = vld [vmem:[%s3374_s9 + $0x58] sm:$0xff] }
 0x140   : > { %v787_v60 = vpop.f32.mrb[4].mxu0  ;;  %v2432_v56 = vpack.c.bf16 %v1144_v55, %v1143_v54  ;;  %v1934_v54 = vld [vmem:[%s3378_s13 + $0x58] sm:$0xff] }
 0x141   : > { %815 = vst.msk [vmem:[#allocation2] sm:$0xff] %vm814_vm2, %v811_v58  ;;  %v802_v61 = vmul.f32 %v1869_v51, %v792_v59  ;;  %v788_v62 = vadd.f32 %v1865_v47, %v787_v60  ;;  %v2109_v63 = vpop.f32.mrb[5].mxu0  ;;  %v2405_v47 = vpack.c.bf16 %v1905_v46, %v1904_v45  ;;  %v1909_v58 = vld [vmem:[%s3374_s9 + $0xe8] sm:$0xff]  ;;  %v1145_v60 = vld [vmem:[%s3374_s9 + $0x60] sm:$0xff] }
 0x142   : > { %v2411_v59 = vpack.c.bf16 %v1909_v58, %v1908_v57  ;;  %v1910_v63 = vld [vmem:[%s3374_s9 + $0xf0] sm:$0xff]  ;;  %v1429_v57 = vld [vmem:[%s3378_s13 + $0x18] sm:$0xff] }
 0x143   : > { %v812_v0 = vadd.f32 %v1870_v53, %v802_v61  ;;  %v793_v1 = vmax.f32 %v788_v62, 0.0  ;;  %2406 = vmatpush3.bf16.msra.mxu0 %v2405_v47  ;;  %v1146_v61 = vld [vmem:[%s3374_s9 + $0x68] sm:$0xff]  ;;  %v1931_v47 = vld [vmem:[%s3378_s13 + $0x40] sm:$0xff] }
 0x144   : > { %2407 = vmatprep.subr.bf16.mxu0 %v2680_v3  ;;  %v2435_v62 = vpack.c.bf16 %v1146_v61, %v1145_v60  ;;  %v2465_v49 = vpack.c.bf16 %v1932_v48, %v1931_v47  ;;  %v1936_v60 = vld [vmem:[%s3378_s13 + $0x68] sm:$0xff]  ;;  %v1951_v47 = vld [vmem:[%s3380_s15] ss:$0 sm:$0xff] }
 0x145   : > { %816 = vst.msk [vmem:[#allocation2 + $0x8] sm:$0xff] %vm814_vm2, %v812_v0  ;;  %v803_v2 = vmul.f32 %v1869_v51, %v793_v1  ;;  %v1906_v51 = vld [vmem:[%s3374_s9 + $0xd0] sm:$0xff]  ;;  %v1911_v0 = vld [vmem:[%s3374_s9 + $0xf8] sm:$0xff] }
 0x146   : > { %v1147_v1 = vld [vmem:[%s3374_s9 + $0x70] sm:$0xff] }
 0x147   : > { %v813_v4 = vadd.f32 %v1870_v53, %v803_v2  ;;  %v2408_v53 = vpack.c.bf16 %v1907_v52, %v1906_v51  ;;  %v2414_v2 = vpack.c.bf16 %v1911_v0, %v1910_v63  ;;  %v1427_v51 = vld [vmem:[%s3378_s13 + $0x8] sm:$0xff] }
 0x148   : > { %v1431_v63 = vld [vmem:[%s3378_s13 + $0x28] sm:$0xff] }
 0x149   : > { %818 = vst.msk [vmem:[#allocation2 + $0x10] sm:$0x7f] %vm817_vm3, %v813_v4  ;;  %2409 = vmatpush3.bf16.msra.mxu0 %v2408_v53  ;;  %v1148_v4 = vld [vmem:[%s3374_s9 + $0x78] sm:$0xff]  ;;  %v1933_v53 = vld [vmem:[%s3378_s13 + $0x50] sm:$0xff] }
 0x14a   : > { %2410 = vmatprep.subr.bf16.mxu0 %v2680_v3  ;;  %v2468_v55 = vpack.c.bf16 %v1934_v54, %v1933_v53  ;;  %v1702_v54 = vstv %s1701_s24  ;;  %s674_s24 = sand.u32 1, %s2668_s25  }
 0x14c   : > { %v831_v5 = vld [vmem:[#allocation2 + $0x1] ss:$2 sm:$0xff]  ;;  %v819_v13 = vld [vmem:[#allocation2] ss:$2 sm:$0xff] }
 0x14d   : > { %2126 = vmatprep.mubr.msk.f32.mxu1 %vm814_vm2, %v831_v5  ;;  %2412 = vmatpush3.bf16.msra.mxu0 %v2411_v59  ;;  %v2438_v5 = vpack.c.bf16 %v1148_v4, %v1147_v1  ;;  %v1935_v59 = vld [vmem:[%s3378_s13 + $0x60] sm:$0xff]  ;;  %v1937_v1 = vld [vmem:[%s3378_s13 + $0x70] sm:$0xff] }
 0x14e   : > { %2413 = vmatprep.subr.bf16.mxu0 %v2680_v3  ;;  %v2471_v61 = vpack.c.bf16 %v1936_v60, %v1935_v59  ;;  %v1432_v4 = vld [vmem:[%s3378_s13 + $0x30] sm:$0xff] }
 0x150   : > { %v833_v10 = vld [vmem:[#allocation2 + $0x11] ss:$2 sm:$0x7]  ;;  %v821_v24 = vld [vmem:[#allocation2 + $0x10] ss:$2 sm:$0x7] }
 0x151   : > { %2127 = vmatmul.mubr.msk.f32.vlgmr.msra.gmra.mrb[0].mxu1 %vm814_vm2, %v833_v10  ;;  %v1006_v27 = vld [vmem:[#allocation2 + $0x2] ss:$2 sm:$0xff]  ;;  %v1008_v37 = vld [vmem:[#allocation2 + $0x12] ss:$2 sm:$0x7]  ;;  %2415 = vmatpush3.bf16.msra.mxu0 %v2414_v2  ;;  %v1938_v2 = vld [vmem:[%s3378_s13 + $0x78] sm:$0xff] }
 0x152   : > { %2363 = vmatpush3.bf16.msra.mxu1 %v2360_v34  ;;  %2145 = vmatprep.mubr.msk.f32.mxu1 %vm814_vm2, %v819_v13  ;;  %v2417_v34 = vpack.c.bf16 %v1134_v33, %v1133_v32  ;;  %v1919_v32 = vld [vmem:[%s3374_s9 + $0x138] sm:$0xff] }
 0x153   : > { %2365 = vmatprep.subr.bf16.mxu1 %v2364_v9  ;;  %2440 = vmatprep.subr.bf16.mxu0 %v2680_v3 }
 0x156   : > { %2367 = vmatpush3.bf16.msra.mxu1 %v2364_v9 }
 0x157   : > { %2369 = vmatprep.subr.bf16.mxu1 %v2368_v14 }
 0x15a   : > { %2371 = vmatpush3.bf16.msra.mxu1 %v2368_v14  ;;  %v1895_v14 = vld [vmem:[%s3373_s8] ss:$0 sm:$0xff] }
 0x15b   : > { %2373 = vmatprep.subr.bf16.mxu1 %v2372_v17 }
 0x15e   : > { %2375 = vmatpush3.bf16.msra.mxu1 %v2372_v17 }
 0x15f   : > { %2377 = vmatprep.subr.bf16.mxu1 %v2376_v20 }
 0x161   : > { %2146 = vmatmul.mubr.msk.f32.vlgmr.msra.gmra.mrb[0].mxu1 %vm814_vm2, %v821_v24  ;;  %v1915_v24 = vld [vmem:[%s3374_s9 + $0x118] sm:$0xff] }
 0x162   : > { %2379 = vmatpush3.bf16.msra.mxu1 %v2376_v20  ;;  %2164 = vmatprep.mubr.msk.f32.mxu1 %vm814_vm2, %v1006_v27  ;;  %v1912_v20 = vld [vmem:[%s3374_s9 + $0x100] sm:$0xff] }
 0x163   : > { %2381 = vmatprep.subr.bf16.mxu1 %v2380_v23  ;;  %v2441_v22 = vpack.c.bf16 %v1913_v21, %v1912_v20  ;;  %v1930_v21 = vld [vmem:[%s3377_s12] ss:$0 sm:$0xff] }
 0x166   : > { %2383 = vmatpush3.bf16.msra.mxu1 %v2380_v23  ;;  %v1914_v23 = vld [vmem:[%s3374_s9 + $0x110] sm:$0xff] }
 0x167   : > { %2385 = vmatprep.subr.bf16.mxu1 %v2384_v28  ;;  %v2444_v27 = vpack.c.bf16 %v1915_v24, %v1914_v23  ;;  %v1941_v24 = vld [vmem:[%s3378_s13 + $0x80] sm:$0xff] }
 0x16a   : > { %2387 = vmatpush3.bf16.msra.mxu1 %v2384_v28  ;;  %v1916_v28 = vld [vmem:[%s3374_s9 + $0x120] sm:$0xff] }
 0x16b   : > { %2389 = vmatprep.subr.bf16.mxu1 %v2388_v31  ;;  %v2447_v30 = vpack.c.bf16 %v1917_v29, %v1916_v28  ;;  %v1944_v28 = vld [vmem:[%s3378_s13 + $0x98] sm:$0xff] }
 0x16e   : > { %2391 = vmatpush3.bf16.msra.mxu1 %v2388_v31  ;;  %v1918_v31 = vld [vmem:[%s3374_s9 + $0x130] sm:$0xff] }
 0x16f   : > { %2416 = vmatprep.subr.bf16.mxu1 %v2680_v3  ;;  %v2450_v33 = vpack.c.bf16 %v1919_v32, %v1918_v31  ;;  %v1945_v32 = vld [vmem:[%s3378_s13 + $0xa0] sm:$0xff] }
 0x171   : > { %2165 = vmatmul.mubr.msk.f32.vlgmr.msra.gmra.mrb[0].mxu1 %vm814_vm2, %v1008_v37  ;;  %v1922_v37 = vld [vmem:[%s3374_s9 + $0x150] sm:$0xff] }
 0x172   : > { %2418 = vmatpush3.bf16.msra.mxu1 %v2417_v34  ;;  %2234 = vmatprep.mubr.msk.f32.mxu1 %vm2681_vm0, %v2682_v6  ;;  %v1920_v34 = vld [vmem:[%s3374_s9 + $0x140] sm:$0xff] }
 0x173   : > { %2419 = vmatprep.subr.bf16.mxu1 %v2680_v3  ;;  %v2453_v36 = vpack.c.bf16 %v1921_v35, %v1920_v34  ;;  %v1947_v35 = vld [vmem:[%s3378_s13 + $0xb0] sm:$0xff] }
 0x176   : > { %2421 = vmatpush3.bf16.msra.mxu1 %v2420_v38  ;;  %v1923_v38 = vld [vmem:[%s3374_s9 + $0x158] sm:$0xff] }
 0x177   : > { %2422 = vmatprep.subr.bf16.mxu1 %v2680_v3  ;;  %v2456_v39 = vpack.c.bf16 %v1923_v38, %v1922_v37 }
 0x17a   : > { %2424 = vmatpush3.bf16.msra.mxu1 %v2423_v41  ;;  %v1925_v41 = vld [vmem:[%s3374_s9 + $0x168] sm:$0xff] }
 0x17b   : > { %2425 = vmatprep.subr.bf16.mxu1 %v2680_v3  ;;  %v2459_v42 = vpack.c.bf16 %v1925_v41, %v1924_v40 }
 0x17e   : > { %2427 = vmatpush3.bf16.msra.mxu1 %v2426_v44  ;;  %v1927_v44 = vld [vmem:[%s3374_s9 + $0x178] sm:$0xff] }
 0x17f   : > { %2428 = vmatprep.subr.bf16.mxu1 %v2680_v3  ;;  %v2462_v45 = vpack.c.bf16 %v1927_v44, %v1926_v43  ;;  %v1950_v43 = vld [vmem:[%s3379_s14] ss:$0 sm:$0xff] }
 0x182   : > { %2430 = vmatpush3.bf16.msra.mxu1 %v2429_v50  ;;  %v1426_v50 = vld [vmem:[%s3378_s13] sm:$0xff] }
 0x183   : > { %2431 = vmatprep.subr.bf16.mxu1 %v2680_v3  ;;  %v2477_v52 = vpack.c.bf16 %v1427_v51, %v1426_v50  ;;  %v1705_v51 = vstv %s1953_s23 }
 0x186   : > { %2433 = vmatpush3.bf16.msra.mxu1 %v2432_v56  ;;  %v1428_v56 = vld [vmem:[%s3378_s13 + $0x10] sm:$0xff] }
 0x187   : > { %2434 = vmatprep.subr.bf16.mxu1 %v2680_v3  ;;  %v2480_v58 = vpack.c.bf16 %v1429_v57, %v1428_v56 }
 0x18a   : > { %2436 = vmatpush3.bf16.msra.mxu1 %v2435_v62  ;;  %v1430_v62 = vld [vmem:[%s3378_s13 + $0x20] sm:$0xff] }
 0x18b   : > { %2437 = vmatprep.subr.bf16.mxu1 %v2680_v3  ;;  %v2483_v0 = vpack.c.bf16 %v1431_v63, %v1430_v62 }
 0x18e   : > { %2439 = vmatpush3.bf16.msra.mxu1 %v2438_v5  ;;  %v2474_v5 = vpack.c.bf16 %v1938_v2, %v1937_v1  ;;  %v1727_v1 = vstv %s1956_s17 }
 0x18f   : > { %2464 = vmatprep.subr.bf16.mxu1 %v2680_v3 }
 0x244   : > { %v2166_v8 = vpop.f32.mrb[0].mxu1 }
 0x245   : > { %v1109_v9 = vadd.f32 %v2166_v8, %v1893_v7  ;;  %v1090_v10 = vpop.f32.mrb[1].mxu1 }
 0x246   : > { %v1108_v12 = vadd.f32 %v1893_v7, %v1090_v10  ;;  %v1433_v7 = vld [vmem:[%s3378_s13 + $0x38] sm:$0xff] }
 0x247   : > { %v1111_v13 = vmax.f32 %v1109_v9, 0.0  ;;  %v2486_v8 = vpack.c.bf16 %v1433_v7, %v1432_v4 }
 0x248   : > { %v1110_v15 = vmax.f32 %v1108_v12, 0.0 }
 0x249   : > { %v1120_v16 = vmul.f32 %v1894_v11, %v1111_v13 }
 0x24a   : > { %v1119_v17 = vmul.f32 %v1894_v11, %v1110_v15  ;;  %v1928_v15 = vld [vmem:[%s3375_s10] ss:$0 sm:$0xff] }
 0x24b   : > { %v1129_v18 = vadd.f32 %v1895_v14, %v1120_v16 }
 0x24c   : > { %v1128_v19 = vadd.f32 %v1895_v14, %v1119_v17 }
 0x24d   : > { %1131 = vst [vmem:[#allocation3 + $0x8] sm:$0x7] %v1129_v18 }
 0x24e   : > { %1130 = vst [vmem:[#allocation3] sm:$0xff] %v1128_v19  ;;  %v1929_v19 = vld [vmem:[%s3376_s11] ss:$0 sm:$0xff] }
 0x255   : > { %v1150_v25 = vld [vmem:[#allocation3 + $0x1] ss:$2 sm:$0x1f]  ;;  %v1132_v26 = vld [vmem:[#allocation3] ss:$2 sm:$0x1f] }
 0x256   : > { %2200 = vmatmul.mubr.f32.vlgmr.msra.gmra.mrb[6].mxu0 %v1150_v25  ;;  %2235 = vmatmul.mubr.f32.vlgmr.msra.gmra.mrb[2].mxu1 %v1132_v26  ;;  %v1309_v46 = vld [vmem:[#allocation3 + $0x2] ss:$2 sm:$0x1f]  ;;  %v1942_v25 = vld [vmem:[%s3378_s13 + $0x88] sm:$0xff] }
 0x257   : > { %2442 = vmatpush3.bf16.msra.mxu0 %v2441_v22  ;;  %2269 = vmatprep.mubr.msk.f32.mxu0 %vm2681_vm0, %v2682_v6  ;;  %v2489_v26 = vpack.c.bf16 %v1942_v25, %v1941_v24 }
 0x258   : > { %2443 = vmatprep.subr.bf16.mxu0 %v2680_v3  ;;  %2288 = vmatprep.mubr.msk.f32.mxu1 %vm2681_vm0, %v2682_v6 }
 0x259   : > { %2466 = vmatpush3.bf16.msra.mxu1 %v2465_v49  ;;  %v1952_v49 = vld [vmem:[%s3381_s16] ss:$0 sm:$0xff] }
 0x25a   : > { %2467 = vmatprep.subr.bf16.mxu1 %v2680_v3 }
 0x25b   : > { %2445 = vmatpush3.bf16.msra.mxu0 %v2444_v27  ;;  %v1943_v27 = vld [vmem:[%s3378_s13 + $0x90] sm:$0xff] }
 0x25c   : > { %2446 = vmatprep.subr.bf16.mxu0 %v2680_v3  ;;  %v2492_v31 = vpack.c.bf16 %v1944_v28, %v1943_v27  ;;  %v1758_v27 = vld [vmem:[%s3384_s19 + $0x1] sm:$0x1] }
 0x25d   : > { %2469 = vmatpush3.bf16.msra.mxu1 %v2468_v55  ;;  %v1716_v55 = vstv %s1954_s18  ;;  %s1767_s18 = scalar_lea.sflag [#allocation6], %s674_s24 }
 0x25e   : > { %2470 = vmatprep.subr.bf16.mxu1 %v2680_v3 }
 0x25f   : > { %2448 = vmatpush3.bf16.msra.mxu0 %v2447_v30 }
 0x260   : > { %2449 = vmatprep.subr.bf16.mxu0 %v2680_v3 }
 0x261   : > { %2472 = vmatpush3.bf16.msra.mxu1 %v2471_v61 }
 0x262   : > { %2473 = vmatprep.subr.bf16.mxu1 %v2680_v3 }
 0x263   : > { %2451 = vmatpush3.bf16.msra.mxu0 %v2450_v33  ;;  %v1946_v33 = vld [vmem:[%s3378_s13 + $0xa8] sm:$0xff] }
 0x264   : > { %2452 = vmatprep.subr.bf16.mxu0 %v2680_v3  ;;  %v2495_v34 = vpack.c.bf16 %v1946_v33, %v1945_v32 }
 0x265   : > { %2475 = vmatpush3.bf16.msra.mxu1 %v2474_v5 }
 0x266   : > { %2488 = vmatprep.subr.bf16.mxu1 %v2680_v3 }
 0x267   : > { %2454 = vmatpush3.bf16.msra.mxu0 %v2453_v36 }
 0x268   : > { %2455 = vmatprep.subr.bf16.mxu0 %v2680_v3 }
 0x26b   : > { %2457 = vmatpush3.bf16.msra.mxu0 %v2456_v39 }
 0x26c   : > { %2458 = vmatprep.subr.bf16.mxu0 %v2680_v3 }
 0x26f   : > { %2460 = vmatpush3.bf16.msra.mxu0 %v2459_v42 }
 0x270   : > { %2461 = vmatprep.subr.bf16.mxu0 %v2680_v3 }
 0x273   : > { %2463 = vmatpush3.bf16.msra.mxu0 %v2462_v45 }
 0x274   : > { %2476 = vmatprep.subr.bf16.mxu0 %v2680_v3 }
 0x276   : > { %2270 = vmatmul.mubr.f32.vlgmr.msra.gmra.mrb[8].mxu0 %v1309_v46 }
 0x277   : > { %2307 = vmatprep.mubr.msk.f32.mxu0 %vm2681_vm0, %v2682_v6  ;;  %2478 = vmatpush3.bf16.msra.mxu0 %v2477_v52  ;;  %v1719_v52 = vstv %s1955_s1 }
 0x278   : > { %2479 = vmatprep.subr.bf16.mxu0 %v2680_v3 }
 0x27b   : > { %2481 = vmatpush3.bf16.msra.mxu0 %v2480_v58 }
 0x27c   : > { %2482 = vmatprep.subr.bf16.mxu0 %v2680_v3 }
 0x27f   : > { %2484 = vmatpush3.bf16.msra.mxu0 %v2483_v0  ;;  %v1713_v0 = vstv %s1711_s30  ;;  %s675_s30 = scalar_lea.vmem [#allocation10], %s674_s24 }
 0x280   : > { %2485 = vmatprep.subr.bf16.mxu0 %v2680_v3  ;;  %s1779_s17 = sshll.u32 %s675_s30, 4  ;;  %s3325_s17 = int_to_ptr.vmem [resolvable:$true] %s1779_s17 }
 0x281   : > { %s2606_s0 = scalar_lea.vmem %s3325_s17, 16  ;;  %p2613_p8 = scmp.lt.s32.totalorder %s3325_s17, %s2611_s28 }
 0x282   : > { %p2607_p10 = scmp.ne.s32.totalorder %s3325_s17, %s2606_s0  ;;  %p2614_p11 = scmp.lt.s32.totalorder %s2612_s26, %s2606_s0 }
 0x283   : > { %2487 = vmatpush3.bf16.msra.mxu0 %v2486_v8 }
 0x284   : > { %p2608_p0 = pnand %p2607_p10, %p3427_p12  ;;  %p2615_p13 = por %p2614_p11, %p2613_p8 }
 0x286   : > { %p2609_p7 = pneg %p2608_p0 }
 0x288   : > { %p2616_p1 = pnand %p2615_p13, %p2609_p7 }
 0x329   : > { %v1234_v9 = vpop.f32.mrb[6].mxu0  ;;  %v1304_v10 = vpop.f32.mrb[2].mxu1 }
 0x32a   : > { %v1305_v11 = vadd.f32 %v1304_v10, %v1234_v9  ;;  %v2201_v12 = vpop.f32.mrb[7].mxu0  ;;  %v2236_v13 = vpop.f32.mrb[3].mxu1 }
 0x349   : > { %v1393_v14 = vpop.f32.mrb[8].mxu0 }
 0x34a   : > { %v1397_v16 = vadd.f32 %v1393_v14, %v1305_v11  ;;  %v2271_v17 = vpop.f32.mrb[9].mxu0 }
 0x34c   : > { %v1405_v18 = vadd.f32 %v1928_v15, %v1397_v16 }
 0x34e   : > { %v1406_v20 = vmax.f32 %v1405_v18, 0.0 }
 0x350   : > { %v1414_v22 = vmul.f32 %v1929_v19, %v1406_v20 }
 0x352   : > { %v1422_v23 = vadd.f32 %v1930_v21, %v1414_v22 }
 0x354   : > { %1424 = vst.msk [vmem:[#allocation4] sm:$0x1f] %vm1423_vm4, %v1422_v23  ;;  %v1747_v23 = vld [vmem:[%s3384_s19] sm:$0x1] }
 0x35b   : > { %v1435_v29 = vld [vmem:[#allocation4 + $0x1] ss:$2 sm:$0x3]  ;;  %v1425_v30 = vld [vmem:[#allocation4] ss:$2 sm:$0x3] }
 0x35c   : > { %2289 = vmatmul.mubr.msk.f32.vlgmr.msra.gmra.mrb[4].mxu1 %vm814_vm2, %v1435_v29  ;;  %2308 = vmatmul.mubr.msk.f32.vlgmr.msra.gmra.mrb[10].mxu0 %vm814_vm2, %v1425_v30  ;;  %v1592_v37 = vld [vmem:[#allocation4 + $0x2] ss:$2 sm:$0x3] }
 0x35d   : > { %2490 = vmatpush3.bf16.msra.mxu1 %v2489_v26  ;;  %2326 = vmatprep.mubr.msk.f32.mxu1 %vm2681_vm0, %v2682_v6  ;;  %v1948_v6 = vld [vmem:[%s3378_s13 + $0xb8] sm:$0xff]  ;;  %v1742_v26 = vld [vmem:[%s3385_s20] sm:$0x1] }
 0x35e   : > { %2491 = vmatprep.subr.bf16.mxu1 %v2680_v3  ;;  %v2498_v36 = vpack.c.bf16 %v1948_v6, %v1947_v35 }
 0x361   : > { %2493 = vmatpush3.bf16.msra.mxu1 %v2492_v31 }
 0x362   : > { %2494 = vmatprep.subr.bf16.mxu1 %v2680_v3 }
 0x365   : > { %2496 = vmatpush3.bf16.msra.mxu1 %v2495_v34 }
 0x366   : > { %2497 = vmatprep.subr.bf16.mxu1 %v2680_v3 }
 0x369   : > { %2499 = vmatpush3.bf16.msra.mxu1 %v2498_v36 }
 0x36c   : > { %2327 = vmatmul.mubr.msk.f32.vlgmr.msra.gmra.mrb[6].mxu1 %vm814_vm2, %v1592_v37 }
 0x42f   : > { %v1514_v38 = vpop.f32.mrb[4].mxu1  ;;  %v1587_v39 = vpop.f32.mrb[10].mxu0 }
 0x430   : > { %v1588_v40 = vadd.f32 %v1587_v39, %v1514_v38  ;;  %v2290_v41 = vpop.f32.mrb[5].mxu1  ;;  %v2309_v42 = vpop.f32.mrb[11].mxu0 }
 0x43f   : > { %v1671_v44 = vpop.f32.mrb[6].mxu1 }
 0x440   : > { %v1675_v45 = vadd.f32 %v1671_v44, %v1588_v40  ;;  %v2328_v46 = vpop.f32.mrb[7].mxu1 }
 0x442   : > { %v1683_v3 = vadd.f32 %v1950_v43, %v1675_v45 }
 0x444   : > { %v1684_v48 = vmax.f32 %v1683_v3, 0.0 }
 0x446   : > { %v1692_v50 = vmul.f32 %v1951_v47, %v1684_v48 }
 0x448   : > { %v1700_v53 = vadd.f32 %v1952_v49, %v1692_v50 }
 0x44a   : > { %v1706_v56 = vmul.f32 %v1705_v51, %v1700_v53  ;;  %v1720_v57 = vmul.f32 %v1719_v52, %v1700_v53  ;;  %v1703_v58 = vmul.f32 %v1702_v54, %v1700_v53  ;;  %v1717_v60 = vmul.f32 %v1716_v55, %v1700_v53 }
 0x44c   : > { %v1708_v59 = vrot.slane %v1706_v56, 1  ;;  %v1722_v61 = vrot.slane %v1720_v57, 1 }
 0x44e   : > { %v1710_v62 = vadd.f32 %v1708_v59, %v1703_v58  ;;  %v1724_v63 = vadd.f32 %v1722_v61, %v1717_v60 }
 0x450   : > { %2568 = vtanh.f32 %v1710_v62 }
 0x451   : > { %2570 = vtanh.f32 %v1724_v63 }
 0x45a   : > { %v2569_v2 = vpop.eup %2568 }
 0x45b   : > { %v2571_v4 = vpop.eup %2570  ;;  %v1714_v5 = vmul.f32 %v2569_v2, %v1713_v0 }
 0x45c   : > { %v1728_v7 = vmul.f32 %v2571_v4, %v1727_v1 }
 0x45e   : > { %v1729_v8 = vadd.f32 %v1728_v7, %v1714_v5 }
 0x460   : > { %v1731_v9 = vsel %vm1730_vm5, %v1729_v8, -inf }
 0x461   : > { %1732 = vmax.xlane.f32.xlu0 %v1731_v9 }
 0x4ee   : > { %v1733_v10 = vpop.xlane.xlu0 %1732 }
 0x4ef   : > { %v1734_v11 = vsub.f32 %v1729_v8, %v1733_v10 }
 0x4f1   : > { %v1735_v12 = vmul.f32 1.442695, %v1734_v11 }
 0x4f3   : > { %2572 = vpow2.f32 %v1735_v12 }
 0x4fd   : > { %v2573_v13 = vpop.eup %2572 }
 0x4fe   : > { %v1737_v14 = vsel %vm1730_vm5, %v2573_v13, 0.0 }
 0x4ff   : > { %1738 = vadd.xlane.f32.xlu0 %v1737_v14 }
 0x58c   : > { %v1739_v15 = vpop.xlane.xlu0 %1738 }
 0x58d   : > { %2574 = vrcp.f32 %v1739_v15 }
 0x597   : > { %v2575_v16 = vpop.eup %2574 }
 0x598   : > { %v1741_v17 = vmul.f32 %v2575_v16, %v2573_v13 }
 0x59a   : > { %v1743_v18 = vmul.f32 %v1741_v17, %v1700_v53  ;;  %v1751_v19 = vrot.slane %v1741_v17, 7 }
 0x59c   : > { %v1744_v20 = vsel %vm1730_vm5, %v1743_v18, 0.0  ;;  %v1753_v21 = vmul.f32 %v1751_v19, %v1700_v53 }
 0x59d   : > { %1745 = vadd.xlane.f32.xlu1 %v1744_v20 }
 0x59e   : > { %v1755_v22 = vsel %vm1754_vm6, %v1753_v21, 0.0 }
 0x5a1   : > { %1756 = vadd.xlane.f32.xlu1 %v1755_v22 }
 0x62a   : > { %v1746_v24 = vpop.xlane.xlu1 %1745 }
 0x62b   : > { %v1748_v25 = vmul.f32 %v1747_v23, %v1746_v24 }
 0x62d   : > { %v1749_v30 = vadd.f32 %v1748_v25, %v1742_v26 }
 0x62e   : > { %v1757_v28 = vpop.xlane.xlu1 %1756 }
 0x62f   : > { %v1760_v29 = vrot.slane %v1757_v28, 1 }
 0x631   : > { %v1762_v31 = vmul.f32 %v1760_v29, %v1758_v27 }
 0x633   : > { %v1763_v32 = vadd.f32 %v1762_v31, %v1749_v30 }
 0x635   : > { %1765 = vst.msk [vmem:[%s675_s30] sm:$0x1] %vm1764_vm7, %v1763_v32 }
 0x636   : > { %2619 = shalt.err (!%p2616_p1)
}
 0x637   : > { %s2620_s24 = scalar_lea.hbm %s3323_s6, 16  ;;  %s2624_s23 = scalar_lea.hbm %s3386_s21, 32 }
 0x638   : > { %p2621_p2 = scmp.ne.s32.totalorder %s3323_s6, %s2620_s24  ;;  %p2625_p9 = scmp.lt.u32.totalorder %s3323_s6, %s3386_s21 }
 0x639   : > { %p2626_p5 = scmp.lt.u32.totalorder %s2624_s23, %s2620_s24  ;;  %p2628_p10 = scmp.lt.u32.totalorder %s2620_s24, %s3323_s6 }
 0x63a   : > { %p2622_p3 = pnand %p2621_p2, %p3427_p12 }
 0x63b   : > { %p2627_p6 = por %p2626_p5, %p2625_p9 }
 0x63c   : > { %p2623_p4 = pneg %p2622_p3 }
 0x63d   : > { %p2629_p0 = por %p2628_p10, %p2627_p6 }
 0x63f   : > { %p2630_p7 = pnand %p2629_p0, %p2623_p4 }
 0x641   : > { %2633 = shalt.err (!%p2630_p7)
}
 0x642   : > { %2513 = dma.vmem_to_hbm [thread:$0]  (%p3427_p12), %s3325_s17, 16, %s3323_s6, %s1767_s18  }
 0x643 PF: > { %p2530_p8 = scmp.ge.s32.totalorder %s2676_s27, 2  ;;  %s1791_s0 = sand.u32 1, %s2664_s2  }
 0x644   : > { %p3428_p11 = scmp.ne.s32.totalorder %s3409_s22, 0  ;;  %s1792_s28 = scalar_lea.sflag [#allocation6], %s1791_s0 }
 0x646   : > { %p2523_p13 = pnand %p2530_p8, %p3428_p11 }
 0x648   : > { %2659 = dma.done.wait (!%p2523_p13), %s1792_s28, 16  }
 0x649   : > { %2661 = vsyncadd (!%p2523_p13), %s1792_s28, 4294967280  ;;  %s3429_s27 = sld [smem:[#allocation15_spill]]  ;;  %s3430_s26 = sld [smem:[#allocation14_spill]] }
 0x64a   : > { %s3431_s24 = sld [smem:[#allocation16_spill]]  ;;  %s3432_s2 = smov %s2668_s25 }
 0x64f   : > { %p33_p1 = scmp.ge.s32.totalorder %s3429_s27, 4   ;;  %s3433_s25 = smov %s3430_s26 }
 0x650   : > { %s3434_s26 = smov %s3431_s24 }
 0x651   :  { %35 = sbr.rel (!%p33_p1) target bundleno = 15 (0xf), region = 163 }
 0x658   :  { %1796 = vsyncpa [#allocation6], 1 }
 0x659   :  { %1798 = vsyncpa [#allocation6 + $0x1], 1 }
 0x65a   :  { %1799 = vsyncpa [#allocation7], 1 }
 0x65b   :  { %1801 = vsyncpa [#allocation7 + $0x1], 1 }
 0x65c   :  { %1802 = vsyncpa [#allocation9], 1 }

</bundles_post_ra>
